<compile_context>
chip_gen: v5e
topology: v5e:2x2
jax: 0.10.0
libtpu: 0.0.40
codegen_flags: <defaults>
</compile_context>

<pallas_src>
import math

import jax
import jax.numpy as jnp
from jax import lax
from jax.experimental import pallas as pl
from jax.experimental.pallas import tpu as pltpu


# ----------------------------------------------------------------------------- in-kernel helpers

_LN_EPS = 1e-5

_ATTN_KEYS = ("lnw", "lnb", "wq", "bq", "wk", "bk", "wv", "bv", "wo", "bo")
_MLP_KEYS = ("lnw", "lnb", "w1", "b1", "w2", "b2")


def _layer_norm(x, w, b, eps=_LN_EPS):
    # x: (T, D); w, b: (1, D)
    mu = jnp.mean(x, axis=-1, keepdims=True)
    xc = x - mu
    var = jnp.mean(xc * xc, axis=-1, keepdims=True)
    return xc * lax.rsqrt(var + eps) * w + b


def _mha_rows(xq, kv, wq, bq, wk, bk, wv, bv, wo, bo, num_heads, bias):
    """Multi-head attention for one batch element.

    xq: (T, D) normalized query source.  kv: (S, D) key/value source.
    bias: additive mask broadcastable to (T, S) (0 / -1e30).
    Returns (T, D) = concat_h(softmax(QhKh^T*scale + bias) Vh) @ Wo + bo,
    computed without lane-axis concatenation (per-head fold into out-proj).
    """
    T, D = xq.shape
    Dh = D // num_heads
    scale = 1.0 / math.sqrt(Dh)

    q = jnp.dot(xq, wq, preferred_element_type=jnp.float32) + bq   # (T, D)
    k = jnp.dot(kv, wk, preferred_element_type=jnp.float32) + bk   # (S, D)
    v = jnp.dot(kv, wv, preferred_element_type=jnp.float32) + bv   # (S, D)

    acc = None
    for h in range(num_heads):                                     # static unroll
        sl = slice(h * Dh, (h + 1) * Dh)
        qh, kh, vh = q[:, sl], k[:, sl], v[:, sl]
        s = jnp.einsum("td,sd->ts", qh, kh,
                       preferred_element_type=jnp.float32) * scale + bias
        s = s - jnp.max(s, axis=-1, keepdims=True)
        e = jnp.exp(s)
        p = e * (1.0 / jnp.sum(e, axis=-1, keepdims=True))         # (T,1) recip, bcast mul
        oh = jnp.dot(p, vh, preferred_element_type=jnp.float32)            # (T, Dh)
        ch = jnp.dot(oh, wo[sl, :], preferred_element_type=jnp.float32)     # (T, D)
        acc = ch if acc is None else acc + ch
    return acc + bo


def _mlp_rows(x, lnw, lnb, w1, b1, w2, b2):
    # LN -> linear -> relu -> linear (shared by FFN sublayer and AdapterLayer).
    xn = _layer_norm(x, lnw, lnb)
    h = jnp.dot(xn, w1, preferred_element_type=jnp.float32) + b1
    h = jnp.maximum(h, jnp.float32(0.0))
    return jnp.dot(h, w2, preferred_element_type=jnp.float32) + b2


# ----------------------------------------------------------------------------- fused kernel

def _make_decoder_layer_kernel(num_heads, has_adapter):
    def kernel(x_ref, mem_ref, mask_ref, *refs):
        n_w = 10 + 10 + 6 + (6 if has_adapter else 0)
        w = [r[...] for r in refs[:n_w]]
        out_ref = refs[n_w]

        sa = w[0:10]
        ca = w[10:20]
        ffn = w[20:26]
        ad = w[26:32] if has_adapter else None

        x = x_ref[0]                                                # (T, D)
        mem = mem_ref[0]                                            # (S, D)
        cross_bias = mask_ref[0]                                    # (1, S), additive
        T = x.shape[0]

        # --- self-attention sublayer (causal) ---
        row = lax.broadcasted_iota(jnp.int32, (T, T), 0)
        col = lax.broadcasted_iota(jnp.int32, (T, T), 1)
        causal_bias = jnp.where(col > row, jnp.float32(-1e30), jnp.float32(0.0))
        xn = _layer_norm(x, sa[0], sa[1])
        x = x + _mha_rows(xn, xn, *sa[2:], num_heads, causal_bias)

        # --- cross-attention sublayer (encoder padding mask) ---
        xn = _layer_norm(x, ca[0], ca[1])
        x = x + _mha_rows(xn, mem, *ca[2:], num_heads, cross_bias)

        # --- feed-forward sublayer ---
        x = x + _mlp_rows(x, *ffn)

        # --- adapter sublayer ---
        if has_adapter:
            x = x + _mlp_rows(x, *ad)

        out_ref[0] = x
    return kernel


def _bcast_spec(arr):
    # Whole array, same block at every grid step (weights / biases stay resident).
    return pl.BlockSpec(arr.shape, lambda b, n=arr.ndim: (0,) * n)


def decoder_layer_forward(tgt, memory, encoder_mask, params, adapter_params, num_heads):
    """Single fused pallas_call over the whole decoder layer; grid over batch."""
    B, T, D = tgt.shape
    S = memory.shape[1]

    if encoder_mask is None:
        add_mask = jnp.zeros((B, 1, S), jnp.float32)
    else:
        add_mask = jnp.where(encoder_mask, jnp.float32(-1e30),
                             jnp.float32(0.0))[:, None, :]

    weights = ([params["sa"][k] for k in _ATTN_KEYS]
               + [params["ca"][k] for k in _ATTN_KEYS]
               + [params["ffn"][k] for k in _MLP_KEYS])
    has_adapter = adapter_params is not None
    if has_adapter:
        weights += [adapter_params[k] for k in _MLP_KEYS]

    return pl.pallas_call(
        _make_decoder_layer_kernel(num_heads, has_adapter),
        out_shape=jax.ShapeDtypeStruct((B, T, D), jnp.float32),
        grid=(B,),
        in_specs=[pl.BlockSpec((1, T, D), lambda b: (b, 0, 0)),
                  pl.BlockSpec((1, S, D), lambda b: (b, 0, 0)),
                  pl.BlockSpec((1, 1, S), lambda b: (b, 0, 0))]
                 + [_bcast_spec(w) for w in weights],
        out_specs=pl.BlockSpec((1, T, D), lambda b: (b, 0, 0)),
        compiler_params=pltpu.CompilerParams(
            dimension_semantics=("parallel",)),
    )(tgt, memory, add_mask, *weights)


# ----------------------------------------------------------------------------- params

def _init_linear(key, din, dout, w_scale=0.2, b_scale=0.1):
    kw, kb = jax.random.split(key)
    w = w_scale * jax.random.normal(kw, (din, dout), dtype=jnp.float32)
    b = b_scale * jax.random.normal(kb, (1, dout), dtype=jnp.float32)
    return w, b


def _init_ln(key, dim):
    kw, kb = jax.random.split(key)
    w = 1.0 + 0.1 * jax.random.normal(kw, (1, dim), dtype=jnp.float32)
    b = 0.1 * jax.random.normal(kb, (1, dim), dtype=jnp.float32)
    return w, b


def _init_attn_params(key, dim):
    ks = jax.random.split(key, 5)
    lnw, lnb = _init_ln(ks[0], dim)
    wq, bq = _init_linear(ks[1], dim, dim)
    wk, bk = _init_linear(ks[2], dim, dim)
    wv, bv = _init_linear(ks[3], dim, dim)
    wo, bo = _init_linear(ks[4], dim, dim)
    return dict(lnw=lnw, lnb=lnb, wq=wq, bq=bq, wk=wk, bk=bk,
                wv=wv, bv=bv, wo=wo, bo=bo)


def _init_mlp_params(key, dim, hidden):
    ks = jax.random.split(key, 3)
    lnw, lnb = _init_ln(ks[0], dim)
    w1, b1 = _init_linear(ks[1], dim, hidden)
    w2, b2 = _init_linear(ks[2], hidden, dim)
    return dict(lnw=lnw, lnb=lnb, w1=w1, b1=b1, w2=w2, b2=b2)


class AdapterTransformerDecoderLayer:
    """JAX/Pallas forward-only port of the PyTorch AdapterTransformerDecoderLayer."""

    def __init__(self, embed_dim, num_heads, ffn_dim, key):
        assert embed_dim % num_heads == 0
        self.embed_dim = embed_dim
        self.num_heads = num_heads
        self.ffn_dim = ffn_dim
        k_sa, k_ca, k_ffn = jax.random.split(key, 3)
        self.params = {
            "sa": _init_attn_params(k_sa, embed_dim),
            "ca": _init_attn_params(k_ca, embed_dim),
            "ffn": _init_mlp_params(k_ffn, embed_dim, ffn_dim),
        }
        self.adapters = {}
        self.adapter_id = None

    def add_adapter(self, adapter_id, projection_dim, key, overwrite=False):
        if overwrite or adapter_id not in self.adapters:
            self.adapters[adapter_id] = _init_mlp_params(
                key, self.embed_dim, projection_dim)

    def __call__(self, tgt, memory, encoder_mask=None):
        adapter_params = (self.adapters[self.adapter_id]
                          if self.adapter_id is not None else None)
        x = decoder_layer_forward(tgt, memory, encoder_mask, self.params,
                                  adapter_params, self.num_heads)
        # TODO(synk): incremental decoding (KV cache) and return_attn weights not implemented.
        return x, None


# ----------------------------------------------------------------------------- reference

def _ref_linear(x, w, b):
    return jnp.einsum("...i,ij->...j", x, w,
                      precision=jax.lax.Precision.HIGHEST) + b


def _ref_layer_norm(x, w, b, eps=_LN_EPS):
    mu = jnp.mean(x, axis=-1, keepdims=True)
    var = jnp.mean((x - mu) ** 2, axis=-1, keepdims=True)
    return (x - mu) / jnp.sqrt(var + eps) * w + b


def _ref_attention(xq, kv, p, num_heads, bias):
    B, T, D = xq.shape
    S = kv.shape[1]
    Dh = D // num_heads
    q = _ref_linear(xq, p["wq"], p["bq"]).reshape(B, T, num_heads, Dh)
    k = _ref_linear(kv, p["wk"], p["bk"]).reshape(B, S, num_heads, Dh)
    v = _ref_linear(kv, p["wv"], p["bv"]).reshape(B, S, num_heads, Dh)
    s = jnp.einsum("bthd,bshd->bhts", q, k,
                   precision=jax.lax.Precision.HIGHEST) / math.sqrt(Dh)
    if bias is not None:
        s = s + bias
    w = jax.nn.softmax(s, axis=-1)
    o = jnp.einsum("bhts,bshd->bthd", w, v,
                   precision=jax.lax.Precision.HIGHEST).reshape(B, T, D)
    return _ref_linear(o, p["wo"], p["bo"])


def _ref_mlp(x, p):
    h = jax.nn.relu(_ref_linear(_ref_layer_norm(x, p["lnw"], p["lnb"]), p["w1"], p["b1"]))
    return x + _ref_linear(h, p["w2"], p["b2"])


def reference_forward(tgt, memory, encoder_mask, params, adapters, adapter_id, num_heads):
    x = tgt
    T = x.shape[1]
    causal = jnp.where(jnp.arange(T)[None, :] > jnp.arange(T)[:, None],
                       jnp.float32(-1e30), jnp.float32(0.0))[None, None]
    xn = _ref_layer_norm(x, params["sa"]["lnw"], params["sa"]["lnb"])
    x = x + _ref_attention(xn, xn, params["sa"], num_heads, causal)

    xn = _ref_layer_norm(x, params["ca"]["lnw"], params["ca"]["lnb"])
    bias = None if encoder_mask is None else jnp.where(
        encoder_mask, jnp.float32(-1e30), jnp.float32(0.0))[:, None, None, :]
    x = x + _ref_attention(xn, memory, params["ca"], num_heads, bias)

    x = _ref_mlp(x, params["ffn"])
    if adapter_id is not None:
        x = _ref_mlp(x, adapters[adapter_id])
    return x


# ----------------------------------------------------------------------------- main

if __name__ == "__main__":
    B, T, S = 2, 8, 8              # batch, target len, memory (source) len
    D, H, F, P = 32, 4, 64, 16     # embed_dim, num_heads, ffn_dim, adapter proj dim

    key = jax.random.PRNGKey(0)
    k_tgt, k_mem, k_layer, k_adapter = jax.random.split(key, 4)
    tgt = jax.random.normal(k_tgt, (B, T, D), dtype=jnp.float32)
    memory = jax.random.normal(k_mem, (B, S, D), dtype=jnp.float32)
    # Encoder padding mask: True = padded (masked) position. Batch 1 pads last 2 tokens.
    encoder_mask = jnp.array([[False] * S,
                              [False] * (S - 2) + [True, True]])

    layer = AdapterTransformerDecoderLayer(D, H, F, k_layer)
    layer.add_adapter("domainA", P, k_adapter)
    layer.adapter_id = "domainA"

    out, attn_w = layer(tgt, memory, encoder_mask=encoder_mask)
    out = jax.block_until_ready(out)

    ref = reference_forward(tgt, memory, encoder_mask, layer.params,
                            layer.adapters, layer.adapter_id, H)

    assert out.shape == (B, T, D), out.shape
    assert attn_w is None
    assert bool(jnp.allclose(out, ref, atol=5e-2, rtol=5e-2)), \
        float(jnp.max(jnp.abs(out - ref)))

    print("KERNEL_OK")
</pallas_src>

<mosaic_0001>
module attributes {stable_mosaic.version = 11 : i64} {
  func.func @kernel(%arg0: i32, %arg1: memref<1x8x32xf32, #tpu.memory_space<vmem>>, %arg2: memref<1x8x32xf32, #tpu.memory_space<vmem>>, %arg3: memref<1x1x8xf32, #tpu.memory_space<vmem>>, %arg4: memref<1x32xf32, #tpu.memory_space<vmem>>, %arg5: memref<1x32xf32, #tpu.memory_space<vmem>>, %arg6: memref<32x32xf32, #tpu.memory_space<vmem>>, %arg7: memref<1x32xf32, #tpu.memory_space<vmem>>, %arg8: memref<32x32xf32, #tpu.memory_space<vmem>>, %arg9: memref<1x32xf32, #tpu.memory_space<vmem>>, %arg10: memref<32x32xf32, #tpu.memory_space<vmem>>, %arg11: memref<1x32xf32, #tpu.memory_space<vmem>>, %arg12: memref<32x32xf32, #tpu.memory_space<vmem>>, %arg13: memref<1x32xf32, #tpu.memory_space<vmem>>, %arg14: memref<1x32xf32, #tpu.memory_space<vmem>>, %arg15: memref<1x32xf32, #tpu.memory_space<vmem>>, %arg16: memref<32x32xf32, #tpu.memory_space<vmem>>, %arg17: memref<1x32xf32, #tpu.memory_space<vmem>>, %arg18: memref<32x32xf32, #tpu.memory_space<vmem>>, %arg19: memref<1x32xf32, #tpu.memory_space<vmem>>, %arg20: memref<32x32xf32, #tpu.memory_space<vmem>>, %arg21: memref<1x32xf32, #tpu.memory_space<vmem>>, %arg22: memref<32x32xf32, #tpu.memory_space<vmem>>, %arg23: memref<1x32xf32, #tpu.memory_space<vmem>>, %arg24: memref<1x32xf32, #tpu.memory_space<vmem>>, %arg25: memref<1x32xf32, #tpu.memory_space<vmem>>, %arg26: memref<32x64xf32, #tpu.memory_space<vmem>>, %arg27: memref<1x64xf32, #tpu.memory_space<vmem>>, %arg28: memref<64x32xf32, #tpu.memory_space<vmem>>, %arg29: memref<1x32xf32, #tpu.memory_space<vmem>>, %arg30: memref<1x32xf32, #tpu.memory_space<vmem>>, %arg31: memref<1x32xf32, #tpu.memory_space<vmem>>, %arg32: memref<32x16xf32, #tpu.memory_space<vmem>>, %arg33: memref<1x16xf32, #tpu.memory_space<vmem>>, %arg34: memref<16x32xf32, #tpu.memory_space<vmem>>, %arg35: memref<1x32xf32, #tpu.memory_space<vmem>>, %arg36: memref<1x8x32xf32, #tpu.memory_space<vmem>>) attributes {dimension_semantics = [#tpu.dimension_semantics<parallel>], iteration_bounds = array<i64: 2>, scalar_prefetch = 0 : i64, scratch_operands = 0 : i64, tpu.core_type = #tpu.core_type<tc>, window_params = [{transform_indices = @transform_0, window_bounds = array<i64: 1, 8, 32>}, {transform_indices = @transform_1, window_bounds = array<i64: 1, 8, 32>}, {transform_indices = @transform_2, window_bounds = array<i64: 1, 1, 8>}, {pipeline_mode = #tpu.pipeline_mode<synchronous>, transform_indices = @transform_3, window_bounds = array<i64: 1, 32>}, {pipeline_mode = #tpu.pipeline_mode<synchronous>, transform_indices = @transform_4, window_bounds = array<i64: 1, 32>}, {pipeline_mode = #tpu.pipeline_mode<synchronous>, transform_indices = @transform_5, window_bounds = array<i64: 32, 32>}, {pipeline_mode = #tpu.pipeline_mode<synchronous>, transform_indices = @transform_6, window_bounds = array<i64: 1, 32>}, {pipeline_mode = #tpu.pipeline_mode<synchronous>, transform_indices = @transform_7, window_bounds = array<i64: 32, 32>}, {pipeline_mode = #tpu.pipeline_mode<synchronous>, transform_indices = @transform_8, window_bounds = array<i64: 1, 32>}, {pipeline_mode = #tpu.pipeline_mode<synchronous>, transform_indices = @transform_9, window_bounds = array<i64: 32, 32>}, {pipeline_mode = #tpu.pipeline_mode<synchronous>, transform_indices = @transform_10, window_bounds = array<i64: 1, 32>}, {pipeline_mode = #tpu.pipeline_mode<synchronous>, transform_indices = @transform_11, window_bounds = array<i64: 32, 32>}, {pipeline_mode = #tpu.pipeline_mode<synchronous>, transform_indices = @transform_12, window_bounds = array<i64: 1, 32>}, {pipeline_mode = #tpu.pipeline_mode<synchronous>, transform_indices = @transform_13, window_bounds = array<i64: 1, 32>}, {pipeline_mode = #tpu.pipeline_mode<synchronous>, transform_indices = @transform_14, window_bounds = array<i64: 1, 32>}, {pipeline_mode = #tpu.pipeline_mode<synchronous>, transform_indices = @transform_15, window_bounds = array<i64: 32, 32>}, {pipeline_mode = #tpu.pipeline_mode<synchronous>, transform_indices = @transform_16, window_bounds = array<i64: 1, 32>}, {pipeline_mode = #tpu.pipeline_mode<synchronous>, transform_indices = @transform_17, window_bounds = array<i64: 32, 32>}, {pipeline_mode = #tpu.pipeline_mode<synchronous>, transform_indices = @transform_18, window_bounds = array<i64: 1, 32>}, {pipeline_mode = #tpu.pipeline_mode<synchronous>, transform_indices = @transform_19, window_bounds = array<i64: 32, 32>}, {pipeline_mode = #tpu.pipeline_mode<synchronous>, transform_indices = @transform_20, window_bounds = array<i64: 1, 32>}, {pipeline_mode = #tpu.pipeline_mode<synchronous>, transform_indices = @transform_21, window_bounds = array<i64: 32, 32>}, {pipeline_mode = #tpu.pipeline_mode<synchronous>, transform_indices = @transform_22, window_bounds = array<i64: 1, 32>}, {pipeline_mode = #tpu.pipeline_mode<synchronous>, transform_indices = @transform_23, window_bounds = array<i64: 1, 32>}, {pipeline_mode = #tpu.pipeline_mode<synchronous>, transform_indices = @transform_24, window_bounds = array<i64: 1, 32>}, {pipeline_mode = #tpu.pipeline_mode<synchronous>, transform_indices = @transform_25, window_bounds = array<i64: 32, 64>}, {pipeline_mode = #tpu.pipeline_mode<synchronous>, transform_indices = @transform_26, window_bounds = array<i64: 1, 64>}, {pipeline_mode = #tpu.pipeline_mode<synchronous>, transform_indices = @transform_27, window_bounds = array<i64: 64, 32>}, {pipeline_mode = #tpu.pipeline_mode<synchronous>, transform_indices = @transform_28, window_bounds = array<i64: 1, 32>}, {pipeline_mode = #tpu.pipeline_mode<synchronous>, transform_indices = @transform_29, window_bounds = array<i64: 1, 32>}, {pipeline_mode = #tpu.pipeline_mode<synchronous>, transform_indices = @transform_30, window_bounds = array<i64: 1, 32>}, {pipeline_mode = #tpu.pipeline_mode<synchronous>, transform_indices = @transform_31, window_bounds = array<i64: 32, 16>}, {pipeline_mode = #tpu.pipeline_mode<synchronous>, transform_indices = @transform_32, window_bounds = array<i64: 1, 16>}, {pipeline_mode = #tpu.pipeline_mode<synchronous>, transform_indices = @transform_33, window_bounds = array<i64: 16, 32>}, {pipeline_mode = #tpu.pipeline_mode<synchronous>, transform_indices = @transform_34, window_bounds = array<i64: 1, 32>}, {transform_indices = @transform_35, window_bounds = array<i64: 1, 8, 32>}]} {
    %c0 = arith.constant 0 : index
    %c0_0 = arith.constant 0 : index
    %0 = vector.load %arg4[%c0, %c0_0] : memref<1x32xf32, #tpu.memory_space<vmem>>, vector<1x32xf32>
    %c0_1 = arith.constant 0 : index
    %c0_2 = arith.constant 0 : index
    %1 = vector.load %arg5[%c0_1, %c0_2] : memref<1x32xf32, #tpu.memory_space<vmem>>, vector<1x32xf32>
    %c0_3 = arith.constant 0 : index
    %c0_4 = arith.constant 0 : index
    %2 = vector.load %arg6[%c0_3, %c0_4] : memref<32x32xf32, #tpu.memory_space<vmem>>, vector<32x32xf32>
    %c0_5 = arith.constant 0 : index
    %c0_6 = arith.constant 0 : index
    %3 = vector.load %arg7[%c0_5, %c0_6] : memref<1x32xf32, #tpu.memory_space<vmem>>, vector<1x32xf32>
    %c0_7 = arith.constant 0 : index
    %c0_8 = arith.constant 0 : index
    %4 = vector.load %arg8[%c0_7, %c0_8] : memref<32x32xf32, #tpu.memory_space<vmem>>, vector<32x32xf32>
    %c0_9 = arith.constant 0 : index
    %c0_10 = arith.constant 0 : index
    %5 = vector.load %arg9[%c0_9, %c0_10] : memref<1x32xf32, #tpu.memory_space<vmem>>, vector<1x32xf32>
    %c0_11 = arith.constant 0 : index
    %c0_12 = arith.constant 0 : index
    %6 = vector.load %arg10[%c0_11, %c0_12] : memref<32x32xf32, #tpu.memory_space<vmem>>, vector<32x32xf32>
    %c0_13 = arith.constant 0 : index
    %c0_14 = arith.constant 0 : index
    %7 = vector.load %arg11[%c0_13, %c0_14] : memref<1x32xf32, #tpu.memory_space<vmem>>, vector<1x32xf32>
    %c0_15 = arith.constant 0 : index
    %c0_16 = arith.constant 0 : index
    %8 = vector.load %arg12[%c0_15, %c0_16] : memref<32x32xf32, #tpu.memory_space<vmem>>, vector<32x32xf32>
    %c0_17 = arith.constant 0 : index
    %c0_18 = arith.constant 0 : index
    %9 = vector.load %arg13[%c0_17, %c0_18] : memref<1x32xf32, #tpu.memory_space<vmem>>, vector<1x32xf32>
    %c0_19 = arith.constant 0 : index
    %c0_20 = arith.constant 0 : index
    %10 = vector.load %arg14[%c0_19, %c0_20] : memref<1x32xf32, #tpu.memory_space<vmem>>, vector<1x32xf32>
    %c0_21 = arith.constant 0 : index
    %c0_22 = arith.constant 0 : index
    %11 = vector.load %arg15[%c0_21, %c0_22] : memref<1x32xf32, #tpu.memory_space<vmem>>, vector<1x32xf32>
    %c0_23 = arith.constant 0 : index
    %c0_24 = arith.constant 0 : index
    %12 = vector.load %arg16[%c0_23, %c0_24] : memref<32x32xf32, #tpu.memory_space<vmem>>, vector<32x32xf32>
    %c0_25 = arith.constant 0 : index
    %c0_26 = arith.constant 0 : index
    %13 = vector.load %arg17[%c0_25, %c0_26] : memref<1x32xf32, #tpu.memory_space<vmem>>, vector<1x32xf32>
    %c0_27 = arith.constant 0 : index
    %c0_28 = arith.constant 0 : index
    %14 = vector.load %arg18[%c0_27, %c0_28] : memref<32x32xf32, #tpu.memory_space<vmem>>, vector<32x32xf32>
    %c0_29 = arith.constant 0 : index
    %c0_30 = arith.constant 0 : index
    %15 = vector.load %arg19[%c0_29, %c0_30] : memref<1x32xf32, #tpu.memory_space<vmem>>, vector<1x32xf32>
    %c0_31 = arith.constant 0 : index
    %c0_32 = arith.constant 0 : index
    %16 = vector.load %arg20[%c0_31, %c0_32] : memref<32x32xf32, #tpu.memory_space<vmem>>, vector<32x32xf32>
    %c0_33 = arith.constant 0 : index
    %c0_34 = arith.constant 0 : index
    %17 = vector.load %arg21[%c0_33, %c0_34] : memref<1x32xf32, #tpu.memory_space<vmem>>, vector<1x32xf32>
    %c0_35 = arith.constant 0 : index
    %c0_36 = arith.constant 0 : index
    %18 = vector.load %arg22[%c0_35, %c0_36] : memref<32x32xf32, #tpu.memory_space<vmem>>, vector<32x32xf32>
    %c0_37 = arith.constant 0 : index
    %c0_38 = arith.constant 0 : index
    %19 = vector.load %arg23[%c0_37, %c0_38] : memref<1x32xf32, #tpu.memory_space<vmem>>, vector<1x32xf32>
    %c0_39 = arith.constant 0 : index
    %c0_40 = arith.constant 0 : index
    %20 = vector.load %arg24[%c0_39, %c0_40] : memref<1x32xf32, #tpu.memory_space<vmem>>, vector<1x32xf32>
    %c0_41 = arith.constant 0 : index
    %c0_42 = arith.constant 0 : index
    %21 = vector.load %arg25[%c0_41, %c0_42] : memref<1x32xf32, #tpu.memory_space<vmem>>, vector<1x32xf32>
    %c0_43 = arith.constant 0 : index
    %c0_44 = arith.constant 0 : index
    %22 = vector.load %arg26[%c0_43, %c0_44] : memref<32x64xf32, #tpu.memory_space<vmem>>, vector<32x64xf32>
    %c0_45 = arith.constant 0 : index
    %c0_46 = arith.constant 0 : index
    %23 = vector.load %arg27[%c0_45, %c0_46] : memref<1x64xf32, #tpu.memory_space<vmem>>, vector<1x64xf32>
    %c0_47 = arith.constant 0 : index
    %c0_48 = arith.constant 0 : index
    %24 = vector.load %arg28[%c0_47, %c0_48] : memref<64x32xf32, #tpu.memory_space<vmem>>, vector<64x32xf32>
    %c0_49 = arith.constant 0 : index
    %c0_50 = arith.constant 0 : index
    %25 = vector.load %arg29[%c0_49, %c0_50] : memref<1x32xf32, #tpu.memory_space<vmem>>, vector<1x32xf32>
    %c0_51 = arith.constant 0 : index
    %c0_52 = arith.constant 0 : index
    %26 = vector.load %arg30[%c0_51, %c0_52] : memref<1x32xf32, #tpu.memory_space<vmem>>, vector<1x32xf32>
    %c0_53 = arith.constant 0 : index
    %c0_54 = arith.constant 0 : index
    %27 = vector.load %arg31[%c0_53, %c0_54] : memref<1x32xf32, #tpu.memory_space<vmem>>, vector<1x32xf32>
    %c0_55 = arith.constant 0 : index
    %c0_56 = arith.constant 0 : index
    %28 = vector.load %arg32[%c0_55, %c0_56] : memref<32x16xf32, #tpu.memory_space<vmem>>, vector<32x16xf32>
    %c0_57 = arith.constant 0 : index
    %c0_58 = arith.constant 0 : index
    %29 = vector.load %arg33[%c0_57, %c0_58] : memref<1x16xf32, #tpu.memory_space<vmem>>, vector<1x16xf32>
    %c0_59 = arith.constant 0 : index
    %c0_60 = arith.constant 0 : index
    %30 = vector.load %arg34[%c0_59, %c0_60] : memref<16x32xf32, #tpu.memory_space<vmem>>, vector<16x32xf32>
    %c0_61 = arith.constant 0 : index
    %c0_62 = arith.constant 0 : index
    %31 = vector.load %arg35[%c0_61, %c0_62] : memref<1x32xf32, #tpu.memory_space<vmem>>, vector<1x32xf32>
    %c0_63 = arith.constant 0 : index
    %c0_64 = arith.constant 0 : index
    %c0_65 = arith.constant 0 : index
    %32 = vector.load %arg1[%c0_63, %c0_64, %c0_65] : memref<1x8x32xf32, #tpu.memory_space<vmem>>, vector<1x8x32xf32>
    %33 = vector.shape_cast %32 : vector<1x8x32xf32> to vector<8x32xf32>
    %c0_66 = arith.constant 0 : index
    %c0_67 = arith.constant 0 : index
    %c0_68 = arith.constant 0 : index
    %34 = vector.load %arg2[%c0_66, %c0_67, %c0_68] : memref<1x8x32xf32, #tpu.memory_space<vmem>>, vector<1x8x32xf32>
    %35 = vector.shape_cast %34 : vector<1x8x32xf32> to vector<8x32xf32>
    %c0_69 = arith.constant 0 : index
    %c0_70 = arith.constant 0 : index
    %c0_71 = arith.constant 0 : index
    %36 = vector.load %arg3[%c0_69, %c0_70, %c0_71] : memref<1x1x8xf32, #tpu.memory_space<vmem>>, vector<1x1x8xf32>
    %37 = vector.shape_cast %36 : vector<1x1x8xf32> to vector<1x8xf32>
    %38 = tpu.iota {dimensions = array<i32: 0>} : vector<8x8xi32>
    %39 = tpu.iota {dimensions = array<i32: 1>} : vector<8x8xi32>
    %40 = arith.cmpi sgt, %39, %38 : vector<8x8xi32>
    %cst = arith.constant -1.000000e+30 : f32
    %cst_72 = arith.constant 0.000000e+00 : f32
    %41 = vector.broadcast %cst : f32 to vector<8x8xf32>
    %42 = vector.broadcast %cst_72 : f32 to vector<8x8xf32>
    %43 = arith.select %40, %41, %42 : vector<8x8xi1>, vector<8x8xf32>
    %cst_73 = arith.constant dense<0.000000e+00> : vector<8xf32>
    %44 = vector.multi_reduction <add>, %33, %cst_73 [1] : vector<8x32xf32> to vector<8xf32>
    %45 = vector.shape_cast %44 : vector<8xf32> to vector<8x1xf32>
    %cst_74 = arith.constant 3.200000e+01 : f32
    %46 = vector.broadcast %cst_74 : f32 to vector<8x1xf32>
    %47 = arith.divf %45, %46 : vector<8x1xf32>
    %48 = vector.broadcast %47 : vector<8x1xf32> to vector<8x32xf32>
    %49 = arith.subf %33, %48 : vector<8x32xf32>
    %50 = arith.mulf %49, %49 : vector<8x32xf32>
    %cst_75 = arith.constant dense<0.000000e+00> : vector<8xf32>
    %51 = vector.multi_reduction <add>, %50, %cst_75 [1] : vector<8x32xf32> to vector<8xf32>
    %52 = vector.shape_cast %51 : vector<8xf32> to vector<8x1xf32>
    %cst_76 = arith.constant 3.200000e+01 : f32
    %53 = vector.broadcast %cst_76 : f32 to vector<8x1xf32>
    %54 = arith.divf %52, %53 : vector<8x1xf32>
    %cst_77 = arith.constant 9.99999974E-6 : f32
    %55 = vector.broadcast %cst_77 : f32 to vector<8x1xf32>
    %56 = arith.addf %54, %55 : vector<8x1xf32>
    %57 = math.rsqrt %56 : vector<8x1xf32>
    %58 = vector.broadcast %57 : vector<8x1xf32> to vector<8x32xf32>
    %59 = arith.mulf %49, %58 : vector<8x32xf32>
    %60 = vector.broadcast %0 : vector<1x32xf32> to vector<8x32xf32>
    %61 = arith.mulf %59, %60 : vector<8x32xf32>
    %62 = vector.broadcast %1 : vector<1x32xf32> to vector<8x32xf32>
    %63 = arith.addf %61, %62 : vector<8x32xf32>
    %cst_78 = arith.constant dense<0.000000e+00> : vector<8x32xf32>
    %64 = tpu.matmul %63, %2, %cst_78 {dimension_numbers = #tpu.dot_dimension_numbers<[1], [0], [0], [1], [0, 0, 1, 1], [], []>} : vector<8x32xf32>, vector<32x32xf32>, vector<8x32xf32> -> vector<8x32xf32>
    %65 = vector.broadcast %3 : vector<1x32xf32> to vector<8x32xf32>
    %66 = arith.addf %64, %65 : vector<8x32xf32>
    %cst_79 = arith.constant dense<0.000000e+00> : vector<8x32xf32>
    %67 = tpu.matmul %63, %4, %cst_79 {dimension_numbers = #tpu.dot_dimension_numbers<[1], [0], [0], [1], [0, 0, 1, 1], [], []>} : vector<8x32xf32>, vector<32x32xf32>, vector<8x32xf32> -> vector<8x32xf32>
    %68 = vector.broadcast %5 : vector<1x32xf32> to vector<8x32xf32>
    %69 = arith.addf %67, %68 : vector<8x32xf32>
    %cst_80 = arith.constant dense<0.000000e+00> : vector<8x32xf32>
    %70 = tpu.matmul %63, %6, %cst_80 {dimension_numbers = #tpu.dot_dimension_numbers<[1], [0], [0], [1], [0, 0, 1, 1], [], []>} : vector<8x32xf32>, vector<32x32xf32>, vector<8x32xf32> -> vector<8x32xf32>
    %71 = vector.broadcast %7 : vector<1x32xf32> to vector<8x32xf32>
    %72 = arith.addf %70, %71 : vector<8x32xf32>
    %73 = vector.extract_strided_slice %66 {offsets = [0, 0], sizes = [8, 8], strides = [1, 1]} : vector<8x32xf32> to vector<8x8xf32>
    %74 = vector.extract_strided_slice %69 {offsets = [0, 0], sizes = [8, 8], strides = [1, 1]} : vector<8x32xf32> to vector<8x8xf32>
    %75 = vector.extract_strided_slice %72 {offsets = [0, 0], sizes = [8, 8], strides = [1, 1]} : vector<8x32xf32> to vector<8x8xf32>
    "tpu.trace_start"() <{level = 10 : i32, message = "td,sd->ts"}> : () -> ()
    %cst_81 = arith.constant dense<0.000000e+00> : vector<8x8xf32>
    %76 = tpu.matmul %73, %74, %cst_81 {dimension_numbers = #tpu.dot_dimension_numbers<[1], [1], [0], [0], [0, 0, 1, 0], [], []>} : vector<8x8xf32>, vector<8x8xf32>, vector<8x8xf32> -> vector<8x8xf32>
    "tpu.trace_stop"() : () -> ()
    %cst_82 = arith.constant 0.353553385 : f32
    %77 = vector.broadcast %cst_82 : f32 to vector<8x8xf32>
    %78 = arith.mulf %76, %77 : vector<8x8xf32>
    %79 = arith.addf %78, %43 : vector<8x8xf32>
    %cst_83 = arith.constant dense<0xFF800000> : vector<8xf32>
    %80 = vector.multi_reduction <maximumf>, %79, %cst_83 [1] : vector<8x8xf32> to vector<8xf32>
    %81 = vector.shape_cast %80 : vector<8xf32> to vector<8x1xf32>
    %82 = vector.broadcast %81 : vector<8x1xf32> to vector<8x8xf32>
    %83 = arith.subf %79, %82 : vector<8x8xf32>
    %84 = math.exp %83 : vector<8x8xf32>
    %cst_84 = arith.constant dense<0.000000e+00> : vector<8xf32>
    %85 = vector.multi_reduction <add>, %84, %cst_84 [1] : vector<8x8xf32> to vector<8xf32>
    %86 = vector.shape_cast %85 : vector<8xf32> to vector<8x1xf32>
    %cst_85 = arith.constant 1.000000e+00 : f32
    %87 = vector.broadcast %cst_85 : f32 to vector<8x1xf32>
    %88 = arith.divf %87, %86 : vector<8x1xf32>
    %89 = vector.broadcast %88 : vector<8x1xf32> to vector<8x8xf32>
    %90 = arith.mulf %84, %89 : vector<8x8xf32>
    %cst_86 = arith.constant dense<0.000000e+00> : vector<8x8xf32>
    %91 = tpu.matmul %90, %75, %cst_86 {dimension_numbers = #tpu.dot_dimension_numbers<[1], [0], [0], [1], [0, 0, 1, 1], [], []>} : vector<8x8xf32>, vector<8x8xf32>, vector<8x8xf32> -> vector<8x8xf32>
    %92 = vector.extract_strided_slice %8 {offsets = [0, 0], sizes = [8, 32], strides = [1, 1]} : vector<32x32xf32> to vector<8x32xf32>
    %cst_87 = arith.constant dense<0.000000e+00> : vector<8x32xf32>
    %93 = tpu.matmul %91, %92, %cst_87 {dimension_numbers = #tpu.dot_dimension_numbers<[1], [0], [0], [1], [0, 0, 1, 1], [], []>} : vector<8x8xf32>, vector<8x32xf32>, vector<8x32xf32> -> vector<8x32xf32>
    %94 = vector.extract_strided_slice %66 {offsets = [0, 8], sizes = [8, 8], strides = [1, 1]} : vector<8x32xf32> to vector<8x8xf32>
    %95 = vector.extract_strided_slice %69 {offsets = [0, 8], sizes = [8, 8], strides = [1, 1]} : vector<8x32xf32> to vector<8x8xf32>
    %96 = vector.extract_strided_slice %72 {offsets = [0, 8], sizes = [8, 8], strides = [1, 1]} : vector<8x32xf32> to vector<8x8xf32>
    "tpu.trace_start"() <{level = 10 : i32, message = "td,sd->ts"}> : () -> ()
    %cst_88 = arith.constant dense<0.000000e+00> : vector<8x8xf32>
    %97 = tpu.matmul %94, %95, %cst_88 {dimension_numbers = #tpu.dot_dimension_numbers<[1], [1], [0], [0], [0, 0, 1, 0], [], []>} : vector<8x8xf32>, vector<8x8xf32>, vector<8x8xf32> -> vector<8x8xf32>
    "tpu.trace_stop"() : () -> ()
    %cst_89 = arith.constant 0.353553385 : f32
    %98 = vector.broadcast %cst_89 : f32 to vector<8x8xf32>
    %99 = arith.mulf %97, %98 : vector<8x8xf32>
    %100 = arith.addf %99, %43 : vector<8x8xf32>
    %cst_90 = arith.constant dense<0xFF800000> : vector<8xf32>
    %101 = vector.multi_reduction <maximumf>, %100, %cst_90 [1] : vector<8x8xf32> to vector<8xf32>
    %102 = vector.shape_cast %101 : vector<8xf32> to vector<8x1xf32>
    %103 = vector.broadcast %102 : vector<8x1xf32> to vector<8x8xf32>
    %104 = arith.subf %100, %103 : vector<8x8xf32>
    %105 = math.exp %104 : vector<8x8xf32>
    %cst_91 = arith.constant dense<0.000000e+00> : vector<8xf32>
    %106 = vector.multi_reduction <add>, %105, %cst_91 [1] : vector<8x8xf32> to vector<8xf32>
    %107 = vector.shape_cast %106 : vector<8xf32> to vector<8x1xf32>
    %cst_92 = arith.constant 1.000000e+00 : f32
    %108 = vector.broadcast %cst_92 : f32 to vector<8x1xf32>
    %109 = arith.divf %108, %107 : vector<8x1xf32>
    %110 = vector.broadcast %109 : vector<8x1xf32> to vector<8x8xf32>
    %111 = arith.mulf %105, %110 : vector<8x8xf32>
    %cst_93 = arith.constant dense<0.000000e+00> : vector<8x8xf32>
    %112 = tpu.matmul %111, %96, %cst_93 {dimension_numbers = #tpu.dot_dimension_numbers<[1], [0], [0], [1], [0, 0, 1, 1], [], []>} : vector<8x8xf32>, vector<8x8xf32>, vector<8x8xf32> -> vector<8x8xf32>
    %113 = vector.extract_strided_slice %8 {offsets = [8, 0], sizes = [8, 32], strides = [1, 1]} : vector<32x32xf32> to vector<8x32xf32>
    %cst_94 = arith.constant dense<0.000000e+00> : vector<8x32xf32>
    %114 = tpu.matmul %112, %113, %cst_94 {dimension_numbers = #tpu.dot_dimension_numbers<[1], [0], [0], [1], [0, 0, 1, 1], [], []>} : vector<8x8xf32>, vector<8x32xf32>, vector<8x32xf32> -> vector<8x32xf32>
    %115 = arith.addf %93, %114 : vector<8x32xf32>
    %116 = vector.extract_strided_slice %66 {offsets = [0, 16], sizes = [8, 8], strides = [1, 1]} : vector<8x32xf32> to vector<8x8xf32>
    %117 = vector.extract_strided_slice %69 {offsets = [0, 16], sizes = [8, 8], strides = [1, 1]} : vector<8x32xf32> to vector<8x8xf32>
    %118 = vector.extract_strided_slice %72 {offsets = [0, 16], sizes = [8, 8], strides = [1, 1]} : vector<8x32xf32> to vector<8x8xf32>
    "tpu.trace_start"() <{level = 10 : i32, message = "td,sd->ts"}> : () -> ()
    %cst_95 = arith.constant dense<0.000000e+00> : vector<8x8xf32>
    %119 = tpu.matmul %116, %117, %cst_95 {dimension_numbers = #tpu.dot_dimension_numbers<[1], [1], [0], [0], [0, 0, 1, 0], [], []>} : vector<8x8xf32>, vector<8x8xf32>, vector<8x8xf32> -> vector<8x8xf32>
    "tpu.trace_stop"() : () -> ()
    %cst_96 = arith.constant 0.353553385 : f32
    %120 = vector.broadcast %cst_96 : f32 to vector<8x8xf32>
    %121 = arith.mulf %119, %120 : vector<8x8xf32>
    %122 = arith.addf %121, %43 : vector<8x8xf32>
    %cst_97 = arith.constant dense<0xFF800000> : vector<8xf32>
    %123 = vector.multi_reduction <maximumf>, %122, %cst_97 [1] : vector<8x8xf32> to vector<8xf32>
    %124 = vector.shape_cast %123 : vector<8xf32> to vector<8x1xf32>
    %125 = vector.broadcast %124 : vector<8x1xf32> to vector<8x8xf32>
    %126 = arith.subf %122, %125 : vector<8x8xf32>
    %127 = math.exp %126 : vector<8x8xf32>
    %cst_98 = arith.constant dense<0.000000e+00> : vector<8xf32>
    %128 = vector.multi_reduction <add>, %127, %cst_98 [1] : vector<8x8xf32> to vector<8xf32>
    %129 = vector.shape_cast %128 : vector<8xf32> to vector<8x1xf32>
    %cst_99 = arith.constant 1.000000e+00 : f32
    %130 = vector.broadcast %cst_99 : f32 to vector<8x1xf32>
    %131 = arith.divf %130, %129 : vector<8x1xf32>
    %132 = vector.broadcast %131 : vector<8x1xf32> to vector<8x8xf32>
    %133 = arith.mulf %127, %132 : vector<8x8xf32>
    %cst_100 = arith.constant dense<0.000000e+00> : vector<8x8xf32>
    %134 = tpu.matmul %133, %118, %cst_100 {dimension_numbers = #tpu.dot_dimension_numbers<[1], [0], [0], [1], [0, 0, 1, 1], [], []>} : vector<8x8xf32>, vector<8x8xf32>, vector<8x8xf32> -> vector<8x8xf32>
    %135 = vector.extract_strided_slice %8 {offsets = [16, 0], sizes = [8, 32], strides = [1, 1]} : vector<32x32xf32> to vector<8x32xf32>
    %cst_101 = arith.constant dense<0.000000e+00> : vector<8x32xf32>
    %136 = tpu.matmul %134, %135, %cst_101 {dimension_numbers = #tpu.dot_dimension_numbers<[1], [0], [0], [1], [0, 0, 1, 1], [], []>} : vector<8x8xf32>, vector<8x32xf32>, vector<8x32xf32> -> vector<8x32xf32>
    %137 = arith.addf %115, %136 : vector<8x32xf32>
    %138 = vector.extract_strided_slice %66 {offsets = [0, 24], sizes = [8, 8], strides = [1, 1]} : vector<8x32xf32> to vector<8x8xf32>
    %139 = vector.extract_strided_slice %69 {offsets = [0, 24], sizes = [8, 8], strides = [1, 1]} : vector<8x32xf32> to vector<8x8xf32>
    %140 = vector.extract_strided_slice %72 {offsets = [0, 24], sizes = [8, 8], strides = [1, 1]} : vector<8x32xf32> to vector<8x8xf32>
    "tpu.trace_start"() <{level = 10 : i32, message = "td,sd->ts"}> : () -> ()
    %cst_102 = arith.constant dense<0.000000e+00> : vector<8x8xf32>
    %141 = tpu.matmul %138, %139, %cst_102 {dimension_numbers = #tpu.dot_dimension_numbers<[1], [1], [0], [0], [0, 0, 1, 0], [], []>} : vector<8x8xf32>, vector<8x8xf32>, vector<8x8xf32> -> vector<8x8xf32>
    "tpu.trace_stop"() : () -> ()
    %cst_103 = arith.constant 0.353553385 : f32
    %142 = vector.broadcast %cst_103 : f32 to vector<8x8xf32>
    %143 = arith.mulf %141, %142 : vector<8x8xf32>
    %144 = arith.addf %143, %43 : vector<8x8xf32>
    %cst_104 = arith.constant dense<0xFF800000> : vector<8xf32>
    %145 = vector.multi_reduction <maximumf>, %144, %cst_104 [1] : vector<8x8xf32> to vector<8xf32>
    %146 = vector.shape_cast %145 : vector<8xf32> to vector<8x1xf32>
    %147 = vector.broadcast %146 : vector<8x1xf32> to vector<8x8xf32>
    %148 = arith.subf %144, %147 : vector<8x8xf32>
    %149 = math.exp %148 : vector<8x8xf32>
    %cst_105 = arith.constant dense<0.000000e+00> : vector<8xf32>
    %150 = vector.multi_reduction <add>, %149, %cst_105 [1] : vector<8x8xf32> to vector<8xf32>
    %151 = vector.shape_cast %150 : vector<8xf32> to vector<8x1xf32>
    %cst_106 = arith.constant 1.000000e+00 : f32
    %152 = vector.broadcast %cst_106 : f32 to vector<8x1xf32>
    %153 = arith.divf %152, %151 : vector<8x1xf32>
    %154 = vector.broadcast %153 : vector<8x1xf32> to vector<8x8xf32>
    %155 = arith.mulf %149, %154 : vector<8x8xf32>
    %cst_107 = arith.constant dense<0.000000e+00> : vector<8x8xf32>
    %156 = tpu.matmul %155, %140, %cst_107 {dimension_numbers = #tpu.dot_dimension_numbers<[1], [0], [0], [1], [0, 0, 1, 1], [], []>} : vector<8x8xf32>, vector<8x8xf32>, vector<8x8xf32> -> vector<8x8xf32>
    %157 = vector.extract_strided_slice %8 {offsets = [24, 0], sizes = [8, 32], strides = [1, 1]} : vector<32x32xf32> to vector<8x32xf32>
    %cst_108 = arith.constant dense<0.000000e+00> : vector<8x32xf32>
    %158 = tpu.matmul %156, %157, %cst_108 {dimension_numbers = #tpu.dot_dimension_numbers<[1], [0], [0], [1], [0, 0, 1, 1], [], []>} : vector<8x8xf32>, vector<8x32xf32>, vector<8x32xf32> -> vector<8x32xf32>
    %159 = arith.addf %137, %158 : vector<8x32xf32>
    %160 = vector.broadcast %9 : vector<1x32xf32> to vector<8x32xf32>
    %161 = arith.addf %159, %160 : vector<8x32xf32>
    %162 = arith.addf %33, %161 : vector<8x32xf32>
    %cst_109 = arith.constant dense<0.000000e+00> : vector<8xf32>
    %163 = vector.multi_reduction <add>, %162, %cst_109 [1] : vector<8x32xf32> to vector<8xf32>
    %164 = vector.shape_cast %163 : vector<8xf32> to vector<8x1xf32>
    %cst_110 = arith.constant 3.200000e+01 : f32
    %165 = vector.broadcast %cst_110 : f32 to vector<8x1xf32>
    %166 = arith.divf %164, %165 : vector<8x1xf32>
    %167 = vector.broadcast %166 : vector<8x1xf32> to vector<8x32xf32>
    %168 = arith.subf %162, %167 : vector<8x32xf32>
    %169 = arith.mulf %168, %168 : vector<8x32xf32>
    %cst_111 = arith.constant dense<0.000000e+00> : vector<8xf32>
    %170 = vector.multi_reduction <add>, %169, %cst_111 [1] : vector<8x32xf32> to vector<8xf32>
    %171 = vector.shape_cast %170 : vector<8xf32> to vector<8x1xf32>
    %cst_112 = arith.constant 3.200000e+01 : f32
    %172 = vector.broadcast %cst_112 : f32 to vector<8x1xf32>
    %173 = arith.divf %171, %172 : vector<8x1xf32>
    %cst_113 = arith.constant 9.99999974E-6 : f32
    %174 = vector.broadcast %cst_113 : f32 to vector<8x1xf32>
    %175 = arith.addf %173, %174 : vector<8x1xf32>
    %176 = math.rsqrt %175 : vector<8x1xf32>
    %177 = vector.broadcast %176 : vector<8x1xf32> to vector<8x32xf32>
    %178 = arith.mulf %168, %177 : vector<8x32xf32>
    %179 = vector.broadcast %10 : vector<1x32xf32> to vector<8x32xf32>
    %180 = arith.mulf %178, %179 : vector<8x32xf32>
    %181 = vector.broadcast %11 : vector<1x32xf32> to vector<8x32xf32>
    %182 = arith.addf %180, %181 : vector<8x32xf32>
    %cst_114 = arith.constant dense<0.000000e+00> : vector<8x32xf32>
    %183 = tpu.matmul %182, %12, %cst_114 {dimension_numbers = #tpu.dot_dimension_numbers<[1], [0], [0], [1], [0, 0, 1, 1], [], []>} : vector<8x32xf32>, vector<32x32xf32>, vector<8x32xf32> -> vector<8x32xf32>
    %184 = vector.broadcast %13 : vector<1x32xf32> to vector<8x32xf32>
    %185 = arith.addf %183, %184 : vector<8x32xf32>
    %cst_115 = arith.constant dense<0.000000e+00> : vector<8x32xf32>
    %186 = tpu.matmul %35, %14, %cst_115 {dimension_numbers = #tpu.dot_dimension_numbers<[1], [0], [0], [1], [0, 0, 1, 1], [], []>} : vector<8x32xf32>, vector<32x32xf32>, vector<8x32xf32> -> vector<8x32xf32>
    %187 = vector.broadcast %15 : vector<1x32xf32> to vector<8x32xf32>
    %188 = arith.addf %186, %187 : vector<8x32xf32>
    %cst_116 = arith.constant dense<0.000000e+00> : vector<8x32xf32>
    %189 = tpu.matmul %35, %16, %cst_116 {dimension_numbers = #tpu.dot_dimension_numbers<[1], [0], [0], [1], [0, 0, 1, 1], [], []>} : vector<8x32xf32>, vector<32x32xf32>, vector<8x32xf32> -> vector<8x32xf32>
    %190 = vector.broadcast %17 : vector<1x32xf32> to vector<8x32xf32>
    %191 = arith.addf %189, %190 : vector<8x32xf32>
    %192 = vector.extract_strided_slice %185 {offsets = [0, 0], sizes = [8, 8], strides = [1, 1]} : vector<8x32xf32> to vector<8x8xf32>
    %193 = vector.extract_strided_slice %188 {offsets = [0, 0], sizes = [8, 8], strides = [1, 1]} : vector<8x32xf32> to vector<8x8xf32>
    %194 = vector.extract_strided_slice %191 {offsets = [0, 0], sizes = [8, 8], strides = [1, 1]} : vector<8x32xf32> to vector<8x8xf32>
    "tpu.trace_start"() <{level = 10 : i32, message = "td,sd->ts"}> : () -> ()
    %cst_117 = arith.constant dense<0.000000e+00> : vector<8x8xf32>
    %195 = tpu.matmul %192, %193, %cst_117 {dimension_numbers = #tpu.dot_dimension_numbers<[1], [1], [0], [0], [0, 0, 1, 0], [], []>} : vector<8x8xf32>, vector<8x8xf32>, vector<8x8xf32> -> vector<8x8xf32>
    "tpu.trace_stop"() : () -> ()
    %cst_118 = arith.constant 0.353553385 : f32
    %196 = vector.broadcast %cst_118 : f32 to vector<8x8xf32>
    %197 = arith.mulf %195, %196 : vector<8x8xf32>
    %198 = vector.broadcast %37 : vector<1x8xf32> to vector<8x8xf32>
    %199 = arith.addf %197, %198 : vector<8x8xf32>
    %cst_119 = arith.constant dense<0xFF800000> : vector<8xf32>
    %200 = vector.multi_reduction <maximumf>, %199, %cst_119 [1] : vector<8x8xf32> to vector<8xf32>
    %201 = vector.shape_cast %200 : vector<8xf32> to vector<8x1xf32>
    %202 = vector.broadcast %201 : vector<8x1xf32> to vector<8x8xf32>
    %203 = arith.subf %199, %202 : vector<8x8xf32>
    %204 = math.exp %203 : vector<8x8xf32>
    %cst_120 = arith.constant dense<0.000000e+00> : vector<8xf32>
    %205 = vector.multi_reduction <add>, %204, %cst_120 [1] : vector<8x8xf32> to vector<8xf32>
    %206 = vector.shape_cast %205 : vector<8xf32> to vector<8x1xf32>
    %cst_121 = arith.constant 1.000000e+00 : f32
    %207 = vector.broadcast %cst_121 : f32 to vector<8x1xf32>
    %208 = arith.divf %207, %206 : vector<8x1xf32>
    %209 = vector.broadcast %208 : vector<8x1xf32> to vector<8x8xf32>
    %210 = arith.mulf %204, %209 : vector<8x8xf32>
    %cst_122 = arith.constant dense<0.000000e+00> : vector<8x8xf32>
    %211 = tpu.matmul %210, %194, %cst_122 {dimension_numbers = #tpu.dot_dimension_numbers<[1], [0], [0], [1], [0, 0, 1, 1], [], []>} : vector<8x8xf32>, vector<8x8xf32>, vector<8x8xf32> -> vector<8x8xf32>
    %212 = vector.extract_strided_slice %18 {offsets = [0, 0], sizes = [8, 32], strides = [1, 1]} : vector<32x32xf32> to vector<8x32xf32>
    %cst_123 = arith.constant dense<0.000000e+00> : vector<8x32xf32>
    %213 = tpu.matmul %211, %212, %cst_123 {dimension_numbers = #tpu.dot_dimension_numbers<[1], [0], [0], [1], [0, 0, 1, 1], [], []>} : vector<8x8xf32>, vector<8x32xf32>, vector<8x32xf32> -> vector<8x32xf32>
    %214 = vector.extract_strided_slice %185 {offsets = [0, 8], sizes = [8, 8], strides = [1, 1]} : vector<8x32xf32> to vector<8x8xf32>
    %215 = vector.extract_strided_slice %188 {offsets = [0, 8], sizes = [8, 8], strides = [1, 1]} : vector<8x32xf32> to vector<8x8xf32>
    %216 = vector.extract_strided_slice %191 {offsets = [0, 8], sizes = [8, 8], strides = [1, 1]} : vector<8x32xf32> to vector<8x8xf32>
    "tpu.trace_start"() <{level = 10 : i32, message = "td,sd->ts"}> : () -> ()
    %cst_124 = arith.constant dense<0.000000e+00> : vector<8x8xf32>
    %217 = tpu.matmul %214, %215, %cst_124 {dimension_numbers = #tpu.dot_dimension_numbers<[1], [1], [0], [0], [0, 0, 1, 0], [], []>} : vector<8x8xf32>, vector<8x8xf32>, vector<8x8xf32> -> vector<8x8xf32>
    "tpu.trace_stop"() : () -> ()
    %cst_125 = arith.constant 0.353553385 : f32
    %218 = vector.broadcast %cst_125 : f32 to vector<8x8xf32>
    %219 = arith.mulf %217, %218 : vector<8x8xf32>
    %220 = vector.broadcast %37 : vector<1x8xf32> to vector<8x8xf32>
    %221 = arith.addf %219, %220 : vector<8x8xf32>
    %cst_126 = arith.constant dense<0xFF800000> : vector<8xf32>
    %222 = vector.multi_reduction <maximumf>, %221, %cst_126 [1] : vector<8x8xf32> to vector<8xf32>
    %223 = vector.shape_cast %222 : vector<8xf32> to vector<8x1xf32>
    %224 = vector.broadcast %223 : vector<8x1xf32> to vector<8x8xf32>
    %225 = arith.subf %221, %224 : vector<8x8xf32>
    %226 = math.exp %225 : vector<8x8xf32>
    %cst_127 = arith.constant dense<0.000000e+00> : vector<8xf32>
    %227 = vector.multi_reduction <add>, %226, %cst_127 [1] : vector<8x8xf32> to vector<8xf32>
    %228 = vector.shape_cast %227 : vector<8xf32> to vector<8x1xf32>
    %cst_128 = arith.constant 1.000000e+00 : f32
    %229 = vector.broadcast %cst_128 : f32 to vector<8x1xf32>
    %230 = arith.divf %229, %228 : vector<8x1xf32>
    %231 = vector.broadcast %230 : vector<8x1xf32> to vector<8x8xf32>
    %232 = arith.mulf %226, %231 : vector<8x8xf32>
    %cst_129 = arith.constant dense<0.000000e+00> : vector<8x8xf32>
    %233 = tpu.matmul %232, %216, %cst_129 {dimension_numbers = #tpu.dot_dimension_numbers<[1], [0], [0], [1], [0, 0, 1, 1], [], []>} : vector<8x8xf32>, vector<8x8xf32>, vector<8x8xf32> -> vector<8x8xf32>
    %234 = vector.extract_strided_slice %18 {offsets = [8, 0], sizes = [8, 32], strides = [1, 1]} : vector<32x32xf32> to vector<8x32xf32>
    %cst_130 = arith.constant dense<0.000000e+00> : vector<8x32xf32>
    %235 = tpu.matmul %233, %234, %cst_130 {dimension_numbers = #tpu.dot_dimension_numbers<[1], [0], [0], [1], [0, 0, 1, 1], [], []>} : vector<8x8xf32>, vector<8x32xf32>, vector<8x32xf32> -> vector<8x32xf32>
    %236 = arith.addf %213, %235 : vector<8x32xf32>
    %237 = vector.extract_strided_slice %185 {offsets = [0, 16], sizes = [8, 8], strides = [1, 1]} : vector<8x32xf32> to vector<8x8xf32>
    %238 = vector.extract_strided_slice %188 {offsets = [0, 16], sizes = [8, 8], strides = [1, 1]} : vector<8x32xf32> to vector<8x8xf32>
    %239 = vector.extract_strided_slice %191 {offsets = [0, 16], sizes = [8, 8], strides = [1, 1]} : vector<8x32xf32> to vector<8x8xf32>
    "tpu.trace_start"() <{level = 10 : i32, message = "td,sd->ts"}> : () -> ()
    %cst_131 = arith.constant dense<0.000000e+00> : vector<8x8xf32>
    %240 = tpu.matmul %237, %238, %cst_131 {dimension_numbers = #tpu.dot_dimension_numbers<[1], [1], [0], [0], [0, 0, 1, 0], [], []>} : vector<8x8xf32>, vector<8x8xf32>, vector<8x8xf32> -> vector<8x8xf32>
    "tpu.trace_stop"() : () -> ()
    %cst_132 = arith.constant 0.353553385 : f32
    %241 = vector.broadcast %cst_132 : f32 to vector<8x8xf32>
    %242 = arith.mulf %240, %241 : vector<8x8xf32>
    %243 = vector.broadcast %37 : vector<1x8xf32> to vector<8x8xf32>
    %244 = arith.addf %242, %243 : vector<8x8xf32>
    %cst_133 = arith.constant dense<0xFF800000> : vector<8xf32>
    %245 = vector.multi_reduction <maximumf>, %244, %cst_133 [1] : vector<8x8xf32> to vector<8xf32>
    %246 = vector.shape_cast %245 : vector<8xf32> to vector<8x1xf32>
    %247 = vector.broadcast %246 : vector<8x1xf32> to vector<8x8xf32>
    %248 = arith.subf %244, %247 : vector<8x8xf32>
    %249 = math.exp %248 : vector<8x8xf32>
    %cst_134 = arith.constant dense<0.000000e+00> : vector<8xf32>
    %250 = vector.multi_reduction <add>, %249, %cst_134 [1] : vector<8x8xf32> to vector<8xf32>
    %251 = vector.shape_cast %250 : vector<8xf32> to vector<8x1xf32>
    %cst_135 = arith.constant 1.000000e+00 : f32
    %252 = vector.broadcast %cst_135 : f32 to vector<8x1xf32>
    %253 = arith.divf %252, %251 : vector<8x1xf32>
    %254 = vector.broadcast %253 : vector<8x1xf32> to vector<8x8xf32>
    %255 = arith.mulf %249, %254 : vector<8x8xf32>
    %cst_136 = arith.constant dense<0.000000e+00> : vector<8x8xf32>
    %256 = tpu.matmul %255, %239, %cst_136 {dimension_numbers = #tpu.dot_dimension_numbers<[1], [0], [0], [1], [0, 0, 1, 1], [], []>} : vector<8x8xf32>, vector<8x8xf32>, vector<8x8xf32> -> vector<8x8xf32>
    %257 = vector.extract_strided_slice %18 {offsets = [16, 0], sizes = [8, 32], strides = [1, 1]} : vector<32x32xf32> to vector<8x32xf32>
    %cst_137 = arith.constant dense<0.000000e+00> : vector<8x32xf32>
    %258 = tpu.matmul %256, %257, %cst_137 {dimension_numbers = #tpu.dot_dimension_numbers<[1], [0], [0], [1], [0, 0, 1, 1], [], []>} : vector<8x8xf32>, vector<8x32xf32>, vector<8x32xf32> -> vector<8x32xf32>
    %259 = arith.addf %236, %258 : vector<8x32xf32>
    %260 = vector.extract_strided_slice %185 {offsets = [0, 24], sizes = [8, 8], strides = [1, 1]} : vector<8x32xf32> to vector<8x8xf32>
    %261 = vector.extract_strided_slice %188 {offsets = [0, 24], sizes = [8, 8], strides = [1, 1]} : vector<8x32xf32> to vector<8x8xf32>
    %262 = vector.extract_strided_slice %191 {offsets = [0, 24], sizes = [8, 8], strides = [1, 1]} : vector<8x32xf32> to vector<8x8xf32>
    "tpu.trace_start"() <{level = 10 : i32, message = "td,sd->ts"}> : () -> ()
    %cst_138 = arith.constant dense<0.000000e+00> : vector<8x8xf32>
    %263 = tpu.matmul %260, %261, %cst_138 {dimension_numbers = #tpu.dot_dimension_numbers<[1], [1], [0], [0], [0, 0, 1, 0], [], []>} : vector<8x8xf32>, vector<8x8xf32>, vector<8x8xf32> -> vector<8x8xf32>
    "tpu.trace_stop"() : () -> ()
    %cst_139 = arith.constant 0.353553385 : f32
    %264 = vector.broadcast %cst_139 : f32 to vector<8x8xf32>
    %265 = arith.mulf %263, %264 : vector<8x8xf32>
    %266 = vector.broadcast %37 : vector<1x8xf32> to vector<8x8xf32>
    %267 = arith.addf %265, %266 : vector<8x8xf32>
    %cst_140 = arith.constant dense<0xFF800000> : vector<8xf32>
    %268 = vector.multi_reduction <maximumf>, %267, %cst_140 [1] : vector<8x8xf32> to vector<8xf32>
    %269 = vector.shape_cast %268 : vector<8xf32> to vector<8x1xf32>
    %270 = vector.broadcast %269 : vector<8x1xf32> to vector<8x8xf32>
    %271 = arith.subf %267, %270 : vector<8x8xf32>
    %272 = math.exp %271 : vector<8x8xf32>
    %cst_141 = arith.constant dense<0.000000e+00> : vector<8xf32>
    %273 = vector.multi_reduction <add>, %272, %cst_141 [1] : vector<8x8xf32> to vector<8xf32>
    %274 = vector.shape_cast %273 : vector<8xf32> to vector<8x1xf32>
    %cst_142 = arith.constant 1.000000e+00 : f32
    %275 = vector.broadcast %cst_142 : f32 to vector<8x1xf32>
    %276 = arith.divf %275, %274 : vector<8x1xf32>
    %277 = vector.broadcast %276 : vector<8x1xf32> to vector<8x8xf32>
    %278 = arith.mulf %272, %277 : vector<8x8xf32>
    %cst_143 = arith.constant dense<0.000000e+00> : vector<8x8xf32>
    %279 = tpu.matmul %278, %262, %cst_143 {dimension_numbers = #tpu.dot_dimension_numbers<[1], [0], [0], [1], [0, 0, 1, 1], [], []>} : vector<8x8xf32>, vector<8x8xf32>, vector<8x8xf32> -> vector<8x8xf32>
    %280 = vector.extract_strided_slice %18 {offsets = [24, 0], sizes = [8, 32], strides = [1, 1]} : vector<32x32xf32> to vector<8x32xf32>
    %cst_144 = arith.constant dense<0.000000e+00> : vector<8x32xf32>
    %281 = tpu.matmul %279, %280, %cst_144 {dimension_numbers = #tpu.dot_dimension_numbers<[1], [0], [0], [1], [0, 0, 1, 1], [], []>} : vector<8x8xf32>, vector<8x32xf32>, vector<8x32xf32> -> vector<8x32xf32>
    %282 = arith.addf %259, %281 : vector<8x32xf32>
    %283 = vector.broadcast %19 : vector<1x32xf32> to vector<8x32xf32>
    %284 = arith.addf %282, %283 : vector<8x32xf32>
    %285 = arith.addf %162, %284 : vector<8x32xf32>
    %cst_145 = arith.constant dense<0.000000e+00> : vector<8xf32>
    %286 = vector.multi_reduction <add>, %285, %cst_145 [1] : vector<8x32xf32> to vector<8xf32>
    %287 = vector.shape_cast %286 : vector<8xf32> to vector<8x1xf32>
    %cst_146 = arith.constant 3.200000e+01 : f32
    %288 = vector.broadcast %cst_146 : f32 to vector<8x1xf32>
    %289 = arith.divf %287, %288 : vector<8x1xf32>
    %290 = vector.broadcast %289 : vector<8x1xf32> to vector<8x32xf32>
    %291 = arith.subf %285, %290 : vector<8x32xf32>
    %292 = arith.mulf %291, %291 : vector<8x32xf32>
    %cst_147 = arith.constant dense<0.000000e+00> : vector<8xf32>
    %293 = vector.multi_reduction <add>, %292, %cst_147 [1] : vector<8x32xf32> to vector<8xf32>
    %294 = vector.shape_cast %293 : vector<8xf32> to vector<8x1xf32>
    %cst_148 = arith.constant 3.200000e+01 : f32
    %295 = vector.broadcast %cst_148 : f32 to vector<8x1xf32>
    %296 = arith.divf %294, %295 : vector<8x1xf32>
    %cst_149 = arith.constant 9.99999974E-6 : f32
    %297 = vector.broadcast %cst_149 : f32 to vector<8x1xf32>
    %298 = arith.addf %296, %297 : vector<8x1xf32>
    %299 = math.rsqrt %298 : vector<8x1xf32>
    %300 = vector.broadcast %299 : vector<8x1xf32> to vector<8x32xf32>
    %301 = arith.mulf %291, %300 : vector<8x32xf32>
    %302 = vector.broadcast %20 : vector<1x32xf32> to vector<8x32xf32>
    %303 = arith.mulf %301, %302 : vector<8x32xf32>
    %304 = vector.broadcast %21 : vector<1x32xf32> to vector<8x32xf32>
    %305 = arith.addf %303, %304 : vector<8x32xf32>
    %cst_150 = arith.constant dense<0.000000e+00> : vector<8x64xf32>
    %306 = tpu.matmul %305, %22, %cst_150 {dimension_numbers = #tpu.dot_dimension_numbers<[1], [0], [0], [1], [0, 0, 1, 1], [], []>} : vector<8x32xf32>, vector<32x64xf32>, vector<8x64xf32> -> vector<8x64xf32>
    %307 = vector.broadcast %23 : vector<1x64xf32> to vector<8x64xf32>
    %308 = arith.addf %306, %307 : vector<8x64xf32>
    %cst_151 = arith.constant 0.000000e+00 : f32
    %309 = vector.broadcast %cst_151 : f32 to vector<8x64xf32>
    %310 = arith.maximumf %308, %309 : vector<8x64xf32>
    %cst_152 = arith.constant dense<0.000000e+00> : vector<8x32xf32>
    %311 = tpu.matmul %310, %24, %cst_152 {dimension_numbers = #tpu.dot_dimension_numbers<[1], [0], [0], [1], [0, 0, 1, 1], [], []>} : vector<8x64xf32>, vector<64x32xf32>, vector<8x32xf32> -> vector<8x32xf32>
    %312 = vector.broadcast %25 : vector<1x32xf32> to vector<8x32xf32>
    %313 = arith.addf %311, %312 : vector<8x32xf32>
    %314 = arith.addf %285, %313 : vector<8x32xf32>
    %cst_153 = arith.constant dense<0.000000e+00> : vector<8xf32>
    %315 = vector.multi_reduction <add>, %314, %cst_153 [1] : vector<8x32xf32> to vector<8xf32>
    %316 = vector.shape_cast %315 : vector<8xf32> to vector<8x1xf32>
    %cst_154 = arith.constant 3.200000e+01 : f32
    %317 = vector.broadcast %cst_154 : f32 to vector<8x1xf32>
    %318 = arith.divf %316, %317 : vector<8x1xf32>
    %319 = vector.broadcast %318 : vector<8x1xf32> to vector<8x32xf32>
    %320 = arith.subf %314, %319 : vector<8x32xf32>
    %321 = arith.mulf %320, %320 : vector<8x32xf32>
    %cst_155 = arith.constant dense<0.000000e+00> : vector<8xf32>
    %322 = vector.multi_reduction <add>, %321, %cst_155 [1] : vector<8x32xf32> to vector<8xf32>
    %323 = vector.shape_cast %322 : vector<8xf32> to vector<8x1xf32>
    %cst_156 = arith.constant 3.200000e+01 : f32
    %324 = vector.broadcast %cst_156 : f32 to vector<8x1xf32>
    %325 = arith.divf %323, %324 : vector<8x1xf32>
    %cst_157 = arith.constant 9.99999974E-6 : f32
    %326 = vector.broadcast %cst_157 : f32 to vector<8x1xf32>
    %327 = arith.addf %325, %326 : vector<8x1xf32>
    %328 = math.rsqrt %327 : vector<8x1xf32>
    %329 = vector.broadcast %328 : vector<8x1xf32> to vector<8x32xf32>
    %330 = arith.mulf %320, %329 : vector<8x32xf32>
    %331 = vector.broadcast %26 : vector<1x32xf32> to vector<8x32xf32>
    %332 = arith.mulf %330, %331 : vector<8x32xf32>
    %333 = vector.broadcast %27 : vector<1x32xf32> to vector<8x32xf32>
    %334 = arith.addf %332, %333 : vector<8x32xf32>
    %cst_158 = arith.constant dense<0.000000e+00> : vector<8x16xf32>
    %335 = tpu.matmul %334, %28, %cst_158 {dimension_numbers = #tpu.dot_dimension_numbers<[1], [0], [0], [1], [0, 0, 1, 1], [], []>} : vector<8x32xf32>, vector<32x16xf32>, vector<8x16xf32> -> vector<8x16xf32>
    %336 = vector.broadcast %29 : vector<1x16xf32> to vector<8x16xf32>
    %337 = arith.addf %335, %336 : vector<8x16xf32>
    %cst_159 = arith.constant 0.000000e+00 : f32
    %338 = vector.broadcast %cst_159 : f32 to vector<8x16xf32>
    %339 = arith.maximumf %337, %338 : vector<8x16xf32>
    %cst_160 = arith.constant dense<0.000000e+00> : vector<8x32xf32>
    %340 = tpu.matmul %339, %30, %cst_160 {dimension_numbers = #tpu.dot_dimension_numbers<[1], [0], [0], [1], [0, 0, 1, 1], [], []>} : vector<8x16xf32>, vector<16x32xf32>, vector<8x32xf32> -> vector<8x32xf32>
    %341 = vector.broadcast %31 : vector<1x32xf32> to vector<8x32xf32>
    %342 = arith.addf %340, %341 : vector<8x32xf32>
    %343 = arith.addf %314, %342 : vector<8x32xf32>
    %c0_161 = arith.constant 0 : index
    %c0_162 = arith.constant 0 : index
    %c0_163 = arith.constant 0 : index
    %344 = vector.load %arg36[%c0_161, %c0_162, %c0_163] : memref<1x8x32xf32, #tpu.memory_space<vmem>>, vector<1x8x32xf32>
    %345 = vector.shape_cast %344 : vector<1x8x32xf32> to vector<8x32xf32>
    %346 = vector.shape_cast %343 : vector<8x32xf32> to vector<1x8x32xf32>
    tpu.vector_store %arg36[%c0_161, %c0_162, %c0_163], %346 {strides = array<i32>} : memref<1x8x32xf32, #tpu.memory_space<vmem>>, vector<1x8x32xf32>,
    return
  }
  func.func @transform_0(%arg0: i32) -> (i32, i32, i32) {
    %c0_i32 = arith.constant 0 : i32
    %c0_i32_0 = arith.constant 0 : i32
    %c0_i32_1 = arith.constant 0 : i32
    return %arg0, %c0_i32, %c0_i32_0 : i32, i32, i32
  }
  func.func @transform_1(%arg0: i32) -> (i32, i32, i32) {
    %c0_i32 = arith.constant 0 : i32
    %c0_i32_0 = arith.constant 0 : i32
    %c0_i32_1 = arith.constant 0 : i32
    return %arg0, %c0_i32, %c0_i32_0 : i32, i32, i32
  }
  func.func @transform_2(%arg0: i32) -> (i32, i32, i32) {
    %c0_i32 = arith.constant 0 : i32
    %c0_i32_0 = arith.constant 0 : i32
    %c0_i32_1 = arith.constant 0 : i32
    return %arg0, %c0_i32, %c0_i32_0 : i32, i32, i32
  }
  func.func @transform_3(%arg0: i32) -> (i32, i32) {
    %c0_i32 = arith.constant 0 : i32
    %c0_i32_0 = arith.constant 0 : i32
    %c0_i32_1 = arith.constant 0 : i32
    return %c0_i32, %c0_i32_0 : i32, i32
  }
  func.func @transform_4(%arg0: i32) -> (i32, i32) {
    %c0_i32 = arith.constant 0 : i32
    %c0_i32_0 = arith.constant 0 : i32
    %c0_i32_1 = arith.constant 0 : i32
    return %c0_i32, %c0_i32_0 : i32, i32
  }
  func.func @transform_5(%arg0: i32) -> (i32, i32) {
    %c0_i32 = arith.constant 0 : i32
    %c0_i32_0 = arith.constant 0 : i32
    %c0_i32_1 = arith.constant 0 : i32
    return %c0_i32, %c0_i32_0 : i32, i32
  }
  func.func @transform_6(%arg0: i32) -> (i32, i32) {
    %c0_i32 = arith.constant 0 : i32
    %c0_i32_0 = arith.constant 0 : i32
    %c0_i32_1 = arith.constant 0 : i32
    return %c0_i32, %c0_i32_0 : i32, i32
  }
  func.func @transform_7(%arg0: i32) -> (i32, i32) {
    %c0_i32 = arith.constant 0 : i32
    %c0_i32_0 = arith.constant 0 : i32
    %c0_i32_1 = arith.constant 0 : i32
    return %c0_i32, %c0_i32_0 : i32, i32
  }
  func.func @transform_8(%arg0: i32) -> (i32, i32) {
    %c0_i32 = arith.constant 0 : i32
    %c0_i32_0 = arith.constant 0 : i32
    %c0_i32_1 = arith.constant 0 : i32
    return %c0_i32, %c0_i32_0 : i32, i32
  }
  func.func @transform_9(%arg0: i32) -> (i32, i32) {
    %c0_i32 = arith.constant 0 : i32
    %c0_i32_0 = arith.constant 0 : i32
    %c0_i32_1 = arith.constant 0 : i32
    return %c0_i32, %c0_i32_0 : i32, i32
  }
  func.func @transform_10(%arg0: i32) -> (i32, i32) {
    %c0_i32 = arith.constant 0 : i32
    %c0_i32_0 = arith.constant 0 : i32
    %c0_i32_1 = arith.constant 0 : i32
    return %c0_i32, %c0_i32_0 : i32, i32
  }
  func.func @transform_11(%arg0: i32) -> (i32, i32) {
    %c0_i32 = arith.constant 0 : i32
    %c0_i32_0 = arith.constant 0 : i32
    %c0_i32_1 = arith.constant 0 : i32
    return %c0_i32, %c0_i32_0 : i32, i32
  }
  func.func @transform_12(%arg0: i32) -> (i32, i32) {
    %c0_i32 = arith.constant 0 : i32
    %c0_i32_0 = arith.constant 0 : i32
    %c0_i32_1 = arith.constant 0 : i32
    return %c0_i32, %c0_i32_0 : i32, i32
  }
  func.func @transform_13(%arg0: i32) -> (i32, i32) {
    %c0_i32 = arith.constant 0 : i32
    %c0_i32_0 = arith.constant 0 : i32
    %c0_i32_1 = arith.constant 0 : i32
    return %c0_i32, %c0_i32_0 : i32, i32
  }
  func.func @transform_14(%arg0: i32) -> (i32, i32) {
    %c0_i32 = arith.constant 0 : i32
    %c0_i32_0 = arith.constant 0 : i32
    %c0_i32_1 = arith.constant 0 : i32
    return %c0_i32, %c0_i32_0 : i32, i32
  }
  func.func @transform_15(%arg0: i32) -> (i32, i32) {
    %c0_i32 = arith.constant 0 : i32
    %c0_i32_0 = arith.constant 0 : i32
    %c0_i32_1 = arith.constant 0 : i32
    return %c0_i32, %c0_i32_0 : i32, i32
  }
  func.func @transform_16(%arg0: i32) -> (i32, i32) {
    %c0_i32 = arith.constant 0 : i32
    %c0_i32_0 = arith.constant 0 : i32
    %c0_i32_1 = arith.constant 0 : i32
    return %c0_i32, %c0_i32_0 : i32, i32
  }
  func.func @transform_17(%arg0: i32) -> (i32, i32) {
    %c0_i32 = arith.constant 0 : i32
    %c0_i32_0 = arith.constant 0 : i32
    %c0_i32_1 = arith.constant 0 : i32
    return %c0_i32, %c0_i32_0 : i32, i32
  }
  func.func @transform_18(%arg0: i32) -> (i32, i32) {
    %c0_i32 = arith.constant 0 : i32
    %c0_i32_0 = arith.constant 0 : i32
    %c0_i32_1 = arith.constant 0 : i32
    return %c0_i32, %c0_i32_0 : i32, i32
  }
  func.func @transform_19(%arg0: i32) -> (i32, i32) {
    %c0_i32 = arith.constant 0 : i32
    %c0_i32_0 = arith.constant 0 : i32
    %c0_i32_1 = arith.constant 0 : i32
    return %c0_i32, %c0_i32_0 : i32, i32
  }
  func.func @transform_20(%arg0: i32) -> (i32, i32) {
    %c0_i32 = arith.constant 0 : i32
    %c0_i32_0 = arith.constant 0 : i32
    %c0_i32_1 = arith.constant 0 : i32
    return %c0_i32, %c0_i32_0 : i32, i32
  }
  func.func @transform_21(%arg0: i32) -> (i32, i32) {
    %c0_i32 = arith.constant 0 : i32
    %c0_i32_0 = arith.constant 0 : i32
    %c0_i32_1 = arith.constant 0 : i32
    return %c0_i32, %c0_i32_0 : i32, i32
  }
  func.func @transform_22(%arg0: i32) -> (i32, i32) {
    %c0_i32 = arith.constant 0 : i32
    %c0_i32_0 = arith.constant 0 : i32
    %c0_i32_1 = arith.constant 0 : i32
    return %c0_i32, %c0_i32_0 : i32, i32
  }
  func.func @transform_23(%arg0: i32) -> (i32, i32) {
    %c0_i32 = arith.constant 0 : i32
    %c0_i32_0 = arith.constant 0 : i32
    %c0_i32_1 = arith.constant 0 : i32
    return %c0_i32, %c0_i32_0 : i32, i32
  }
  func.func @transform_24(%arg0: i32) -> (i32, i32) {
    %c0_i32 = arith.constant 0 : i32
    %c0_i32_0 = arith.constant 0 : i32
    %c0_i32_1 = arith.constant 0 : i32
    return %c0_i32, %c0_i32_0 : i32, i32
  }
  func.func @transform_25(%arg0: i32) -> (i32, i32) {
    %c0_i32 = arith.constant 0 : i32
    %c0_i32_0 = arith.constant 0 : i32
    %c0_i32_1 = arith.constant 0 : i32
    return %c0_i32, %c0_i32_0 : i32, i32
  }
  func.func @transform_26(%arg0: i32) -> (i32, i32) {
    %c0_i32 = arith.constant 0 : i32
    %c0_i32_0 = arith.constant 0 : i32
    %c0_i32_1 = arith.constant 0 : i32
    return %c0_i32, %c0_i32_0 : i32, i32
  }
  func.func @transform_27(%arg0: i32) -> (i32, i32) {
    %c0_i32 = arith.constant 0 : i32
    %c0_i32_0 = arith.constant 0 : i32
    %c0_i32_1 = arith.constant 0 : i32
    return %c0_i32, %c0_i32_0 : i32, i32
  }
  func.func @transform_28(%arg0: i32) -> (i32, i32) {
    %c0_i32 = arith.constant 0 : i32
    %c0_i32_0 = arith.constant 0 : i32
    %c0_i32_1 = arith.constant 0 : i32
    return %c0_i32, %c0_i32_0 : i32, i32
  }
  func.func @transform_29(%arg0: i32) -> (i32, i32) {
    %c0_i32 = arith.constant 0 : i32
    %c0_i32_0 = arith.constant 0 : i32
    %c0_i32_1 = arith.constant 0 : i32
    return %c0_i32, %c0_i32_0 : i32, i32
  }
  func.func @transform_30(%arg0: i32) -> (i32, i32) {
    %c0_i32 = arith.constant 0 : i32
    %c0_i32_0 = arith.constant 0 : i32
    %c0_i32_1 = arith.constant 0 : i32
    return %c0_i32, %c0_i32_0 : i32, i32
  }
  func.func @transform_31(%arg0: i32) -> (i32, i32) {
    %c0_i32 = arith.constant 0 : i32
    %c0_i32_0 = arith.constant 0 : i32
    %c0_i32_1 = arith.constant 0 : i32
    return %c0_i32, %c0_i32_0 : i32, i32
  }
  func.func @transform_32(%arg0: i32) -> (i32, i32) {
    %c0_i32 = arith.constant 0 : i32
    %c0_i32_0 = arith.constant 0 : i32
    %c0_i32_1 = arith.constant 0 : i32
    return %c0_i32, %c0_i32_0 : i32, i32
  }
  func.func @transform_33(%arg0: i32) -> (i32, i32) {
    %c0_i32 = arith.constant 0 : i32
    %c0_i32_0 = arith.constant 0 : i32
    %c0_i32_1 = arith.constant 0 : i32
    return %c0_i32, %c0_i32_0 : i32, i32
  }
  func.func @transform_34(%arg0: i32) -> (i32, i32) {
    %c0_i32 = arith.constant 0 : i32
    %c0_i32_0 = arith.constant 0 : i32
    %c0_i32_1 = arith.constant 0 : i32
    return %c0_i32, %c0_i32_0 : i32, i32
  }
  func.func @transform_35(%arg0: i32) -> (i32, i32, i32) {
    %c0_i32 = arith.constant 0 : i32
    %c0_i32_0 = arith.constant 0 : i32
    %c0_i32_1 = arith.constant 0 : i32
    return %arg0, %c0_i32, %c0_i32_0 : i32, i32, i32
  }
}

</mosaic_0001>

<bundles_post_ra>
// kernel: tpu_custom_call.1
= control target key start
LH: loop header
LB: loop body
LE: loop exit
PB: predicated region body
PF: predicated region fallthrough
CT: control target
= control target key end

     0   :  { %s3839_s6 = smov 1   ;;  %s3840_s10 = smov 2   ;;  %s4618_s0 = inlined_call_operand.smem [shape: u32[36], index: -1, kind: input, shape index: {}] }
   0x1   :  { %s3903_s5 = sld [smem:[%s4618_s0]]   ;;  %s3841_s14 = smov 3  }
   0x2   :  { %s3908_s9 = sld [smem:[%s4618_s0 + %s3839_s6]]   ;;  %s3842_s18 = smov 4  }
   0x3   :  { %s3913_s13 = sld [smem:[%s4618_s0 + %s3840_s10]]   ;;  %s3843_s22 = smov 5  }
   0x4   :  { %s3918_s17 = sld [smem:[%s4618_s0 + %s3841_s14]]   ;;  %s3844_s26 = smov 6  }
   0x5   :  { %s3923_s21 = sld [smem:[%s4618_s0 + %s3842_s18]]   ;;  %s3845_s30 = smov 7  }
   0x6   :  { %s3928_s25 = sld [smem:[%s4618_s0 + %s3843_s22]]   ;;  %s3846_s4 = smov 8  }
   0x7   :  { %4641 = sst [smem:[#allocation36_spill]] %s3903_s5  ;;  %s3847_s10 = smov 9  }
   0x8   :  { %4642 = sst [smem:[#allocation37_spill]] %s3908_s9  ;;  %s3848_s15 = smov 10  }
   0x9   :  { %4643 = sst [smem:[#allocation38_spill]] %s3913_s13  ;;  %s3849_s20 = smov 11  }
   0xa   :  { %4644 = sst [smem:[#allocation39_spill]] %s3918_s17  ;;  %s3851_s1 = smov 13  }
   0xb   :  { %4645 = sst [smem:[#allocation40_spill]] %s3923_s21  ;;  %s3852_s7 = smov 14  }
   0xc   :  { %4646 = sst [smem:[#allocation41_spill]] %s3928_s25  ;;  %s3854_s22 = smov 16  }
   0xd   :  { %s3933_s29 = sld [smem:[%s4618_s0 + %s3844_s26]]   ;;  %s3850_s26 = smov 12  }
   0xe   :  { %s3938_s3 = sld [smem:[%s4618_s0 + %s3845_s30]]   ;;  %s3855_s28 = smov 17  }
   0xf   :  { %s3943_s8 = sld [smem:[%s4618_s0 + %s3846_s4]]  }
  0x10   :  { %s3948_s14 = sld [smem:[%s4618_s0 + %s3847_s10]]  }
  0x11   :  { %s3953_s19 = sld [smem:[%s4618_s0 + %s3848_s15]]   ;;  %s3853_s15 = smov 15  }
  0x12   :  { %s3958_s24 = sld [smem:[%s4618_s0 + %s3849_s20]]  }
  0x13   :  { %4647 = sst [smem:[#allocation42_spill]] %s3933_s29 }
  0x14   :  { %4648 = sst [smem:[#allocation43_spill]] %s3938_s3 }
  0x15   :  { %4649 = sst [smem:[#allocation44_spill]] %s3943_s8 }
  0x16   :  { %4650 = sst [smem:[#allocation45_spill]] %s3948_s14 }
  0x17   :  { %4651 = sst [smem:[#allocation46_spill]] %s3953_s19 }
  0x18   :  { %4652 = sst [smem:[#allocation47_spill]] %s3958_s24 }
  0x19   :  { %s3963_s30 = sld [smem:[%s4618_s0 + %s3850_s26]]  }
  0x1a   :  { %s3968_s6 = sld [smem:[%s4618_s0 + %s3851_s1]]  }
  0x1b   :  { %s3973_s12 = sld [smem:[%s4618_s0 + %s3852_s7]]   ;;  %s3856_s7 = smov 18  }
  0x1c   :  { %s3978_s20 = sld [smem:[%s4618_s0 + %s3853_s15]]   ;;  %s3857_s15 = smov 19  }
  0x1d   :  { %s3983_s27 = sld [smem:[%s4618_s0 + %s3854_s22]]   ;;  %s3858_s22 = smov 20  }
  0x1e   :  { %s3988_s4 = sld [smem:[%s4618_s0 + %s3855_s28]]   ;;  %s3859_s28 = smov 21  }
  0x1f   :  { %4653 = sst [smem:[#allocation48_spill]] %s3963_s30 }
  0x20   :  { %4654 = sst [smem:[#allocation49_spill]] %s3968_s6 }
  0x21   :  { %4655 = sst [smem:[#allocation50_spill]] %s3973_s12 }
  0x22   :  { %s3993_s12 = sld [smem:[%s4618_s0 + %s3856_s7]]   ;;  %s3860_s7 = smov 22  }
  0x23   :  { %4656 = sst [smem:[#allocation51_spill]] %s3983_s27 }
  0x24   :  { %4657 = sst [smem:[#allocation52_spill]] %s3988_s4 }
  0x25   :  { %s3998_s6 = sld [smem:[%s4618_s0 + %s3857_s15]]   ;;  %s3861_s15 = smov 23  }
  0x26   :  { %s4003_s27 = sld [smem:[%s4618_s0 + %s3858_s22]]   ;;  %s3862_s22 = smov 24  }
  0x27   :  { %s4008_s30 = sld [smem:[%s4618_s0 + %s3859_s28]]   ;;  %s3863_s28 = smov 25  }
  0x28   :  { %4658 = sst [smem:[#allocation53_spill]] %s3993_s12 }
  0x29   :  { %s4013_s12 = sld [smem:[%s4618_s0 + %s3860_s7]]   ;;  %s3864_s7 = smov 26  }
  0x2a   :  { %s4018_s19 = sld [smem:[%s4618_s0 + %s3861_s15]]   ;;  %s3865_s15 = smov 27  }
  0x2b   :  { %4659 = sst [smem:[#allocation54_spill]] %s3998_s6 }
  0x2c   :  { %4660 = sst [smem:[#allocation55_spill]] %s4003_s27 }
  0x2d   :  { %s4023_s27 = sld [smem:[%s4618_s0 + %s3862_s22]]   ;;  %s3866_s22 = smov 28  }
  0x2e   :  { %s4028_s29 = sld [smem:[%s4618_s0 + %s3863_s28]]   ;;  %s3867_s28 = smov 29  }
  0x2f   :  { %4661 = sst [smem:[#allocation56_spill]] %s4013_s12 }
  0x30   :  { %s4033_s8 = sld [smem:[%s4618_s0 + %s3864_s7]]   ;;  %s3868_s7 = smov 30  }
  0x31   :  { %s4038_s21 = sld [smem:[%s4618_s0 + %s3865_s15]]   ;;  %s3869_s15 = smov 31  }
  0x32   :  { %s4043_s17 = sld [smem:[%s4618_s0 + %s3866_s22]]   ;;  %s3870_s22 = smov 32  }
  0x33   :  { %s4048_s14 = sld [smem:[%s4618_s0 + %s3867_s28]]   ;;  %s3871_s28 = smov 33  }
  0x34   :  { %s4053_s3 = sld [smem:[%s4618_s0 + %s3868_s7]]   ;;  %s3872_s7 = smov 34  }
  0x35   :  { %s4063_s25 = sld [smem:[%s4618_s0 + %s3870_s22]]  }
  0x36   :  { %4662 = sst [smem:[#allocation57_spill]] %s4033_s8 }
  0x37   :  { %4663 = sst [smem:[#allocation58_spill]] %s4038_s21 }
  0x38   :  { %s4058_s21 = sld [smem:[%s4618_s0 + %s3869_s15]]   ;;  %s3873_s15 = smov 35  }
  0x39   :  { %s4068_s13 = sld [smem:[%s4618_s0 + %s3871_s28]]  }
  0x3a   :  { %4664 = sst [smem:[#allocation59_spill]] %s4053_s3 }
  0x3b   :  { %4666 = sst [smem:[#allocation61_spill]] %s4063_s25 }
  0x3c   :  { %s4073_s5 = sld [smem:[%s4618_s0 + %s3872_s7]]  }
  0x3e   :  { %4665 = sst [smem:[#allocation60_spill]] %s4058_s21 }
  0x3f   :  { %s4078_s21 = sld [smem:[%s4618_s0 + %s3873_s15]]  }
  0x42   :  { %4667 = sst [smem:[#allocation62_spill]] %s4073_s5 }
  0x45   :  { %4668 = sst [smem:[#allocation63_spill]] %s4078_s21 }
  0x46   :  { %76 = vsyncpa [#allocation3], 0 }
  0x47   :  { %78 = vsyncpa [#allocation3 + $0x1], 0 }
  0x48   :  { %79 = vsyncpa [#allocation6], 0 }
  0x49   :  { %80 = vsyncpa [#allocation9], 0 }
  0x4a   :  { %81 = vsyncpa [#allocation12], 0 }
  0x4b   :  { %82 = vsyncpa [#allocation15], 0 }
  0x4c   :  { %83 = vsyncpa [#allocation18], 0 }
  0x4d   :  { %84 = vsyncpa [#allocation21], 0 }
  0x4e   :  { %85 = vsyncpa [#allocation24], 0 }
  0x4f   :  { %86 = vsyncpa [#allocation4], 0 }
  0x50   :  { %88 = vsyncpa [#allocation4 + $0x1], 0  ;;  %s4080_s22 = smov 0   ;;  %s4082_s23 = smov 0  }
  0x51   :  { %s4084_s26 = smov 0   ;;  %s4086_s28 = smov 0  }
  0x52 LB: > { %s4669_s12 = sld [smem:[#allocation56_spill]]  ;;  %s4104_s1 = sadd.s32 4294967295, %s3837_s28   ;;  %s3829_s23 = sphi %s4082_s23, %s4726_s23   ;;  %s3825_s22 = sphi %s4080_s22, %s4725_s22   ;;  %s3837_s28 = sphi %s4086_s28, %s4728_s28   ;;  %s3833_s26 = sphi %s4084_s26, %s4727_s26  }
  0x53   : > { %s4670_s8 = sld [smem:[#allocation57_spill]]  ;;  %p2919_p0 = scmp.ge.s32.totalorder %s3837_s28, 1 }
  0x54   : > { %s4671_s6 = sld [smem:[#allocation54_spill]]  ;;  %p4635_p1 = scmp.eq.s32.totalorder %s4104_s1, 0 }
  0x55   : > { %s4672_s4 = sld [smem:[#allocation52_spill]]  ;;  %p875_p2 = scmp.lt.s32.totalorder %s3837_s28, 3 }
  0x56   : > { %s4673_s3 = sld [smem:[#allocation59_spill]]  ;;  %s3874_s7 = smov [#allocation5]  }
  0x57   : > { %s4674_s24 = sld [smem:[#allocation47_spill]]  ;;  %p4109_p3 = pnand %p2919_p0, %p875_p2 }
  0x58   : > { %s4113_s10 = sshll.u32 %s3874_s7, 4  ;;  %s984_s16 = sshll.u32 %s4008_s30, 4  ;;  %s913_s10 = int_to_ptr.vmem [resolvable:$true] %s4113_s10  ;;  %s4149_s16 = int_to_ptr.hbm [resolvable:$true] %s984_s16 }
  0x59   : > { %s4675_s2 = scalar_select %p4109_p3, 1, 0 }
  0x5a   : > { %p3061_p4 = pneg %p4109_p3  ;;  %s3875_s18 = smov [#allocation8]  }
  0x5b   : > { %4676 = sst [smem:[#allocation64_spill]] %s4675_s2  ;;  %s950_s11 = sshll.u32 %s4672_s4, 4  ;;  %s4126_s11 = int_to_ptr.hbm [resolvable:$true] %s950_s11 }
  0x5c   : > { %p4122_p6 = pnand %p3061_p4, %p4635_p1  ;;  %s4129_s7 = sshll.u32 %s3875_s18, 4  ;;  %s953_s7 = int_to_ptr.vmem [resolvable:$true] %s4129_s7 }
  0x5d   : > { %s910_s0 = sshll.u32 %s4674_s24, 4  ;;  %s3300_s2 = scalar_lea.hbm %s4674_s24, 32  ;;  %s4101_s0 = int_to_ptr.hbm [resolvable:$true] %s910_s0 }
  0x5e   : > { %s3293_s21 = sshra.s32 %s4101_s0, 4  ;;  %p4134_p8 = pneg %p4122_p6  ;;  %s3294_s21 = int_to_ptr.hbm [resolvable:$true] %s3293_s21 }
  0x5f   : > { %s3295_s5 = scalar_lea.hbm %s3294_s21, 32  ;;  %p3301_p11 = scmp.lt.s32.totalorder %s3294_s21, %s4674_s24 }
  0x60   : > { %p3296_p7 = scmp.ne.s32.totalorder %s3294_s21, %s3295_s5  ;;  %p3302_p12 = scmp.lt.s32.totalorder %s3300_s2, %s3295_s5 }
  0x62   : > { %p3298_p9 = pnand %p4134_p8, %p3296_p7  ;;  %p3303_p13 = por %p3302_p12, %p3301_p11 }
  0x64   : > { %p3299_p10 = pneg %p3298_p9 }
  0x66   : > { %p3304_p0 = pnand %p3303_p13, %p3299_p10 }
  0x68   : > { %3307 = shalt.err (!%p3304_p0)
}
  0x69   : > { %s4629_s18 = smov 128   ;;  %s3877_s9 = smov 8  }
  0x6a   : > { %3064 = dma.hbm_to_vmem [thread:$0]  (!%p4122_p6), %s4101_s0, 512, %s913_s10, [#allocation6], %s4629_s18, %s4629_s18, %s3877_s9  }
  0x6b   : > { %s3323_s5 = sshra.s32 %s4126_s11, 4  ;;  %s3330_s2 = scalar_lea.hbm %s4672_s4, 32  ;;  %s3324_s5 = int_to_ptr.hbm [resolvable:$true] %s3323_s5 }
  0x6c   : > { %s3325_s21 = scalar_lea.hbm %s3324_s5, 32  ;;  %p3331_p9 = scmp.lt.s32.totalorder %s3324_s5, %s4672_s4 }
  0x6d   : > { %p3326_p2 = scmp.ne.s32.totalorder %s3324_s5, %s3325_s21  ;;  %p3332_p10 = scmp.lt.s32.totalorder %s3330_s2, %s3325_s21 }
  0x6f   : > { %p3328_p4 = pnand %p3326_p2, %p4134_p8  ;;  %p3333_p11 = por %p3332_p10, %p3331_p9 }
  0x71   : > { %p3329_p7 = pneg %p3328_p4 }
  0x73   : > { %p3334_p12 = pnand %p3333_p11, %p3329_p7 }
  0x75   : > { %3337 = shalt.err (!%p3334_p12)
}
  0x76   : > { %3070 = dma.hbm_to_vmem [thread:$0]  (!%p4122_p6), %s4126_s11, 512, %s953_s7, [#allocation9], %s4629_s18, %s4629_s18, %s3877_s9  }
  0x77   : > { %s1011_s0 = sshll.u32 %s4018_s19, 4  ;;  %s3878_s10 = smov [#allocation11]   ;;  %s4163_s0 = int_to_ptr.hbm [resolvable:$true] %s1011_s0 }
  0x78   : > { %s986_s24 = sshll.u32 %s3878_s10, 4  ;;  %s3353_s5 = sshra.s32 %s4149_s16, 4  ;;  %s987_s24 = int_to_ptr.vmem [resolvable:$true] %s986_s24  ;;  %s3354_s5 = int_to_ptr.hbm [resolvable:$true] %s3353_s5 }
  0x79   : > { %s3355_s21 = scalar_lea.hbm %s3354_s5, 32  ;;  %s3360_s2 = scalar_lea.hbm %s4008_s30, 32 }
  0x7a   : > { %p3356_p13 = scmp.ne.s32.totalorder %s3354_s5, %s3355_s21  ;;  %p3361_p4 = scmp.lt.s32.totalorder %s3354_s5, %s4008_s30 }
  0x7b   : > { %p3362_p7 = scmp.lt.s32.totalorder %s3360_s2, %s3355_s21 }
  0x7c   : > { %p3358_p0 = pnand %p3356_p13, %p4134_p8 }
  0x7d   : > { %p3363_p9 = por %p3362_p7, %p3361_p4 }
  0x7e   : > { %p3359_p2 = pneg %p3358_p0 }
  0x80   : > { %p3364_p10 = pnand %p3363_p9, %p3359_p2 }
  0x82   : > { %3367 = shalt.err (!%p3364_p10)
}
  0x83   : > { %3076 = dma.hbm_to_vmem [thread:$0]  (!%p4122_p6), %s4149_s16, 512, %s987_s24, [#allocation12], %s4629_s18, %s4629_s18, %s3877_s9  }
  0x84   : > { %s3879_s11 = smov [#allocation14]   ;;  %s1034_s10 = sshll.u32 %s4028_s29, 4  ;;  %s4177_s10 = int_to_ptr.hbm [resolvable:$true] %s1034_s10 }
  0x85   : > { %s1013_s7 = sshll.u32 %s3879_s11, 4  ;;  %s3383_s5 = sshra.s32 %s4163_s0, 4  ;;  %s1014_s7 = int_to_ptr.vmem [resolvable:$true] %s1013_s7  ;;  %s3384_s5 = int_to_ptr.hbm [resolvable:$true] %s3383_s5 }
  0x86   : > { %s3385_s21 = scalar_lea.hbm %s3384_s5, 1  ;;  %s3390_s2 = scalar_lea.hbm %s4018_s19, 1 }
  0x87   : > { %p3386_p11 = scmp.ne.s32.totalorder %s3384_s5, %s3385_s21  ;;  %p3391_p0 = scmp.lt.s32.totalorder %s3384_s5, %s4018_s19 }
  0x88   : > { %p3392_p2 = scmp.lt.s32.totalorder %s3390_s2, %s3385_s21 }
  0x89   : > { %p3388_p12 = pnand %p3386_p11, %p4134_p8 }
  0x8a   : > { %p3393_p4 = por %p3392_p2, %p3391_p0 }
  0x8b   : > { %p3389_p13 = pneg %p3388_p12 }
  0x8d   : > { %p3394_p7 = pnand %p3393_p4, %p3389_p13 }
  0x8f   : > { %3397 = shalt.err (!%p3394_p7)
}
  0x90   : > { %3082 = dma.hbm_to_vmem [thread:$0]  (!%p4122_p6), %s4163_s0, 16, %s1014_s7, [#allocation15]  }
  0x91   : > { %s1064_s24 = sshll.u32 %s4043_s17, 4  ;;  %s3880_s16 = smov [#allocation17]   ;;  %s4188_s24 = int_to_ptr.hbm [resolvable:$true] %s1064_s24 }
  0x92   : > { %s1036_s11 = sshll.u32 %s3880_s16, 4  ;;  %s3413_s5 = sshra.s32 %s4177_s10, 4  ;;  %s1037_s11 = int_to_ptr.vmem [resolvable:$true] %s1036_s11  ;;  %s3414_s5 = int_to_ptr.hbm [resolvable:$true] %s3413_s5 }
  0x93   : > { %s3415_s21 = scalar_lea.hbm %s3414_s5, 32  ;;  %s3420_s2 = scalar_lea.hbm %s4028_s29, 32 }
  0x94   : > { %p3416_p9 = scmp.ne.s32.totalorder %s3414_s5, %s3415_s21  ;;  %p3421_p12 = scmp.lt.s32.totalorder %s3414_s5, %s4028_s29 }
  0x95   : > { %p3422_p13 = scmp.lt.s32.totalorder %s3420_s2, %s3415_s21 }
  0x96   : > { %p3418_p10 = pnand %p3416_p9, %p4134_p8 }
  0x97   : > { %p3423_p0 = por %p3422_p13, %p3421_p12 }
  0x98   : > { %p3419_p11 = pneg %p3418_p10 }
  0x9a   : > { %p3424_p2 = pnand %p3423_p0, %p3419_p11 }
  0x9c   : > { %3427 = shalt.err (!%p3424_p2)
}
  0x9d   : > { %3088 = dma.hbm_to_vmem [thread:$0]  (!%p4122_p6), %s4177_s10, 512, %s1037_s11, [#allocation18], %s4629_s18, %s4629_s18, %s3877_s9  }
  0x9e   : > { %s3881_s0 = smov [#allocation20]   ;;  %s1088_s16 = sshll.u32 %s4673_s3, 4  ;;  %s4202_s16 = int_to_ptr.hbm [resolvable:$true] %s1088_s16 }
  0x9f   : > { %s1066_s7 = sshll.u32 %s3881_s0, 4  ;;  %s3443_s5 = sshra.s32 %s4188_s24, 4  ;;  %s1067_s7 = int_to_ptr.vmem [resolvable:$true] %s1066_s7  ;;  %s3444_s5 = int_to_ptr.hbm [resolvable:$true] %s3443_s5 }
  0xa0   : > { %s3445_s21 = scalar_lea.hbm %s3444_s5, 1  ;;  %s3450_s2 = scalar_lea.hbm %s4043_s17, 1 }
  0xa1   : > { %p3446_p4 = scmp.ne.s32.totalorder %s3444_s5, %s3445_s21  ;;  %p3451_p10 = scmp.lt.s32.totalorder %s3444_s5, %s4043_s17 }
  0xa2   : > { %p3452_p11 = scmp.lt.s32.totalorder %s3450_s2, %s3445_s21 }
  0xa3   : > { %p3448_p7 = pnand %p3446_p4, %p4134_p8 }
  0xa4   : > { %p3453_p12 = por %p3452_p11, %p3451_p10 }
  0xa5   : > { %p3449_p9 = pneg %p3448_p7 }
  0xa7   : > { %p3454_p13 = pnand %p3453_p12, %p3449_p9 }
  0xa9   : > { %3457 = shalt.err (!%p3454_p13)
}
  0xaa   : > { %3094 = dma.hbm_to_vmem [thread:$0]  (!%p4122_p6), %s4188_s24, 16, %s1067_s7, [#allocation21]  }
  0xab   : > { %s933_s10 = sshll.u32 %s3978_s20, 4  ;;  %s3882_s11 = smov [#allocation23]   ;;  %s4213_s10 = int_to_ptr.hbm [resolvable:$true] %s933_s10 }
  0xac   : > { %s1090_s0 = sshll.u32 %s3882_s11, 4  ;;  %s3473_s5 = sshra.s32 %s4202_s16, 4  ;;  %s1091_s0 = int_to_ptr.vmem [resolvable:$true] %s1090_s0  ;;  %s3474_s5 = int_to_ptr.hbm [resolvable:$true] %s3473_s5 }
  0xad   : > { %s3475_s21 = scalar_lea.hbm %s3474_s5, 1  ;;  %s3480_s2 = scalar_lea.hbm %s4673_s3, 1 }
  0xae   : > { %p3476_p0 = scmp.ne.s32.totalorder %s3474_s5, %s3475_s21  ;;  %p3481_p7 = scmp.lt.s32.totalorder %s3474_s5, %s4673_s3 }
  0xaf   : > { %p3482_p9 = scmp.lt.s32.totalorder %s3480_s2, %s3475_s21 }
  0xb0   : > { %p3478_p2 = pnand %p3476_p0, %p4134_p8 }
  0xb1   : > { %p3483_p10 = por %p3482_p9, %p3481_p7 }
  0xb2   : > { %p3479_p4 = pneg %p3478_p2 }
  0xb4   : > { %p3484_p11 = pnand %p3483_p10, %p3479_p4 }
  0xb6   : > { %3487 = shalt.err (!%p3484_p11)
}
  0xb7   : > { %3100 = dma.hbm_to_vmem [thread:$0]  (!%p4122_p6), %s4202_s16, 16, %s1091_s0, [#allocation24]  }
  0xb8   : > { %s3883_s24 = smov [#allocation7]   ;;  %s967_s11 = sshll.u32 %s4671_s6, 4  ;;  %s4224_s11 = int_to_ptr.hbm [resolvable:$true] %s967_s11 }
  0xb9   : > { %s935_s7 = sshll.u32 %s3883_s24, 4  ;;  %s3503_s5 = sshra.s32 %s4213_s10, 4  ;;  %s936_s7 = int_to_ptr.vmem [resolvable:$true] %s935_s7  ;;  %s3504_s5 = int_to_ptr.hbm [resolvable:$true] %s3503_s5 }
  0xba   : > { %s3505_s21 = scalar_lea.hbm %s3504_s5, 32  ;;  %s3510_s2 = scalar_lea.hbm %s3978_s20, 32 }
  0xbb   : > { %p3506_p12 = scmp.ne.s32.totalorder %s3504_s5, %s3505_s21  ;;  %p3511_p2 = scmp.lt.s32.totalorder %s3504_s5, %s3978_s20 }
  0xbc   : > { %p3512_p4 = scmp.lt.s32.totalorder %s3510_s2, %s3505_s21 }
  0xbd   : > { %p3508_p13 = pnand %p3506_p12, %p4134_p8 }
  0xbe   : > { %p3513_p7 = por %p3512_p4, %p3511_p2 }
  0xbf   : > { %p3509_p0 = pneg %p3508_p13 }
  0xc1   : > { %p3514_p9 = pnand %p3513_p7, %p3509_p0 }
  0xc3   : > { %3517 = shalt.err (!%p3514_p9)
}
  0xc4   : > { %3067 = dma.hbm_to_vmem [thread:$0]  (!%p4122_p6), %s4213_s10, 512, %s936_s7, [#allocation6], %s4629_s18, %s4629_s18, %s3877_s9  }
  0xc5   : > { %s999_s16 = sshll.u32 %s4669_s12, 4  ;;  %s3884_s0 = smov [#allocation10]   ;;  %s4238_s16 = int_to_ptr.hbm [resolvable:$true] %s999_s16 }
  0xc6   : > { %s969_s24 = sshll.u32 %s3884_s0, 4  ;;  %s3533_s5 = sshra.s32 %s4224_s11, 4  ;;  %s970_s24 = int_to_ptr.vmem [resolvable:$true] %s969_s24  ;;  %s3534_s5 = int_to_ptr.hbm [resolvable:$true] %s3533_s5 }
  0xc7   : > { %s3535_s21 = scalar_lea.hbm %s3534_s5, 32  ;;  %s3540_s2 = scalar_lea.hbm %s4671_s6, 32 }
  0xc8   : > { %p3536_p10 = scmp.ne.s32.totalorder %s3534_s5, %s3535_s21  ;;  %p3541_p13 = scmp.lt.s32.totalorder %s3534_s5, %s4671_s6 }
  0xc9   : > { %p3542_p0 = scmp.lt.s32.totalorder %s3540_s2, %s3535_s21 }
  0xca   : > { %p3538_p11 = pnand %p3536_p10, %p4134_p8 }
  0xcb   : > { %p3543_p2 = por %p3542_p0, %p3541_p13 }
  0xcc   : > { %p3539_p12 = pneg %p3538_p11 }
  0xce   : > { %p3544_p4 = pnand %p3543_p2, %p3539_p12 }
  0xd0   : > { %3547 = shalt.err (!%p3544_p4)
}
  0xd1   : > { %3073 = dma.hbm_to_vmem [thread:$0]  (!%p4122_p6), %s4224_s11, 512, %s970_s24, [#allocation9], %s4629_s18, %s4629_s18, %s3877_s9  }
  0xd2   : > { %s3885_s10 = smov [#allocation13]   ;;  %s1023_s0 = sshll.u32 %s4023_s27, 4  ;;  %s4252_s0 = int_to_ptr.hbm [resolvable:$true] %s1023_s0 }
  0xd3   : > { %s1001_s7 = sshll.u32 %s3885_s10, 4  ;;  %s3563_s5 = sshra.s32 %s4238_s16, 4  ;;  %s1002_s7 = int_to_ptr.vmem [resolvable:$true] %s1001_s7  ;;  %s3564_s5 = int_to_ptr.hbm [resolvable:$true] %s3563_s5 }
  0xd4   : > { %s3565_s21 = scalar_lea.hbm %s3564_s5, 1  ;;  %s3570_s2 = scalar_lea.hbm %s4669_s12, 1 }
  0xd5   : > { %p3566_p7 = scmp.ne.s32.totalorder %s3564_s5, %s3565_s21  ;;  %p3571_p11 = scmp.lt.s32.totalorder %s3564_s5, %s4669_s12 }
  0xd6   : > { %p3572_p12 = scmp.lt.s32.totalorder %s3570_s2, %s3565_s21 }
  0xd7   : > { %p3568_p9 = pnand %p3566_p7, %p4134_p8 }
  0xd8   : > { %p3573_p13 = por %p3572_p12, %p3571_p11 }
  0xd9   : > { %p3569_p10 = pneg %p3568_p9 }
  0xdb   : > { %p3574_p0 = pnand %p3573_p13, %p3569_p10 }
  0xdd   : > { %3577 = shalt.err (!%p3574_p0)
}
  0xde   : > { %3079 = dma.hbm_to_vmem [thread:$0]  (!%p4122_p6), %s4238_s16, 16, %s1002_s7, [#allocation12]  }
  0xdf   : > { %s1049_s11 = sshll.u32 %s4670_s8, 4  ;;  %s3886_s24 = smov [#allocation16]   ;;  %s4263_s11 = int_to_ptr.hbm [resolvable:$true] %s1049_s11 }
  0xe0   : > { %s1025_s10 = sshll.u32 %s3886_s24, 4  ;;  %s3593_s5 = sshra.s32 %s4252_s0, 4  ;;  %s1026_s10 = int_to_ptr.vmem [resolvable:$true] %s1025_s10  ;;  %s3594_s5 = int_to_ptr.hbm [resolvable:$true] %s3593_s5 }
  0xe1   : > { %s3595_s21 = scalar_lea.hbm %s3594_s5, 1  ;;  %s3600_s2 = scalar_lea.hbm %s4023_s27, 1 }
  0xe2   : > { %p3596_p2 = scmp.ne.s32.totalorder %s3594_s5, %s3595_s21  ;;  %p3601_p9 = scmp.lt.s32.totalorder %s3594_s5, %s4023_s27 }
  0xe3   : > { %p3602_p10 = scmp.lt.s32.totalorder %s3600_s2, %s3595_s21 }
  0xe4   : > { %p3598_p4 = pnand %p3596_p2, %p4134_p8 }
  0xe5   : > { %p3603_p11 = por %p3602_p10, %p3601_p9 }
  0xe6   : > { %p3599_p7 = pneg %p3598_p4 }
  0xe8   : > { %p3604_p12 = pnand %p3603_p11, %p3599_p7 }
  0xea   : > { %3607 = shalt.err (!%p3604_p12)
}
  0xeb   : > { %3085 = dma.hbm_to_vmem [thread:$0]  (!%p4122_p6), %s4252_s0, 16, %s1026_s10, [#allocation15]  }
  0xec   : > { %s3887_s16 = smov [#allocation19]   ;;  %s1076_s24 = sshll.u32 %s4048_s14, 4  ;;  %s4274_s24 = int_to_ptr.hbm [resolvable:$true] %s1076_s24 }
  0xed   : > { %s1051_s7 = sshll.u32 %s3887_s16, 4  ;;  %s3623_s5 = sshra.s32 %s4263_s11, 4  ;;  %s1052_s7 = int_to_ptr.vmem [resolvable:$true] %s1051_s7  ;;  %s3624_s5 = int_to_ptr.hbm [resolvable:$true] %s3623_s5 }
  0xee   : > { %s3625_s21 = scalar_lea.hbm %s3624_s5, 1  ;;  %s3630_s2 = scalar_lea.hbm %s4670_s8, 1 }
  0xef   : > { %p3626_p13 = scmp.ne.s32.totalorder %s3624_s5, %s3625_s21  ;;  %p3631_p4 = scmp.lt.s32.totalorder %s3624_s5, %s4670_s8 }
  0xf0   : > { %p3632_p7 = scmp.lt.s32.totalorder %s3630_s2, %s3625_s21 }
  0xf1   : > { %p3628_p0 = pnand %p3626_p13, %p4134_p8 }
  0xf2   : > { %p3633_p9 = por %p3632_p7, %p3631_p4 }
  0xf3   : > { %p3629_p2 = pneg %p3628_p0 }
  0xf5   : > { %p3634_p10 = pnand %p3633_p9, %p3629_p2 }
  0xf7   : > { %3637 = shalt.err (!%p3634_p10)
}
  0xf8   : > { %3091 = dma.hbm_to_vmem [thread:$0]  (!%p4122_p6), %s4263_s11, 16, %s1052_s7, [#allocation18]  }
  0xf9   : > { %s1105_s0 = sshll.u32 %s4068_s13, 4  ;;  %s3888_s10 = smov [#allocation22]   ;;  %s4285_s0 = int_to_ptr.hbm [resolvable:$true] %s1105_s0 }
  0xfa   : > { %s1078_s16 = sshll.u32 %s3888_s10, 4  ;;  %s3653_s5 = sshra.s32 %s4274_s24, 4  ;;  %s1079_s16 = int_to_ptr.vmem [resolvable:$true] %s1078_s16  ;;  %s3654_s5 = int_to_ptr.hbm [resolvable:$true] %s3653_s5 }
  0xfb   : > { %s3655_s21 = scalar_lea.hbm %s3654_s5, 1  ;;  %s3660_s2 = scalar_lea.hbm %s4048_s14, 1 }
  0xfc   : > { %p3656_p11 = scmp.ne.s32.totalorder %s3654_s5, %s3655_s21  ;;  %p3661_p0 = scmp.lt.s32.totalorder %s3654_s5, %s4048_s14 }
  0xfd   : > { %p3662_p2 = scmp.lt.s32.totalorder %s3660_s2, %s3655_s21 }
  0xfe   : > { %p3658_p12 = pnand %p3656_p11, %p4134_p8 }
  0xff   : > { %p3663_p4 = por %p3662_p2, %p3661_p0 }
 0x100   : > { %p3659_p13 = pneg %p3658_p12 }
 0x102   : > { %p3664_p7 = pnand %p3663_p4, %p3659_p13 }
 0x104   : > { %3667 = shalt.err (!%p3664_p7)
}
 0x105   : > { %3097 = dma.hbm_to_vmem [thread:$0]  (!%p4122_p6), %s4274_s24, 16, %s1079_s16, [#allocation21]  }
 0x106   : > { %s3889_s11 = smov [#allocation25]   ;;  %s3683_s10 = sshra.s32 %s4285_s0, 4  ;;  %s3684_s10 = int_to_ptr.hbm [resolvable:$true] %s3683_s10 }
 0x107   : > { %s1107_s7 = sshll.u32 %s3889_s11, 4  ;;  %s3685_s18 = scalar_lea.hbm %s3684_s10, 16  ;;  %s1108_s7 = int_to_ptr.vmem [resolvable:$true] %s1107_s7 }
 0x108   : > { %p3686_p9 = scmp.ne.s32.totalorder %s3684_s10, %s3685_s18  ;;  %s3690_s5 = scalar_lea.hbm %s4068_s13, 16 }
 0x109   : > { %p3691_p12 = scmp.lt.s32.totalorder %s3684_s10, %s4068_s13  ;;  %p3692_p13 = scmp.lt.s32.totalorder %s3690_s5, %s3685_s18 }
 0x10a   : > { %p3688_p10 = pnand %p3686_p9, %p4134_p8 }
 0x10b   : > { %p3693_p0 = por %p3692_p13, %p3691_p12 }
 0x10c   : > { %p3689_p11 = pneg %p3688_p10 }
 0x10e   : > { %p3694_p2 = pnand %p3693_p0, %p3689_p11 }
 0x110   : > { %3697 = shalt.err (!%p3694_p2)
}
 0x111   : > { %s4679_s24 = smov 128   ;;  %s2918_s25 = sadd.s32 4294967294, %s3837_s28  }
 0x112   : > { %3103 = dma.hbm_to_vmem [thread:$0]  (!%p4122_p6), %s4285_s0, 256, %s1108_s7, [#allocation24], %s4679_s24, %s4679_s24, %s3877_s9  }
 0x113   : > { %s4308_s15 = sadd.s32 1, %s3837_s28   ;;  %s127_s16 = sadd.s32 1, %s3833_s26 }
 0x114   : > { %s124_s18 = ssub.s32 %s3837_s28, %s4308_s15  ;;  %s4680_s21 = sld [smem:[#allocation37_spill]] }
 0x115   : > { %p125_p8 = scmp.eq.s32.totalorder %s124_s18, 0  ;;  %p134_p4 = scmp.ne.s32.totalorder %s3833_s26, %s3829_s23 }
 0x116   : > { %p135_p7 = scmp.eq.s32.totalorder %s3837_s28, 0  ;;  %p140_p9 = scmp.ne.s32.totalorder %s3829_s23, %s3825_s22 }
 0x117   : > { %s4319_s2 = scalar_select %p125_p8, %s3833_s26, %s127_s16  }
 0x118   : > { %p4321_p10 = por %p135_p7, %p134_p4  ;;  %p4327_p6 = por %p4635_p1, %p140_p9 }
 0x119   : > { %p862_p11 = scmp.eq.s32.totalorder %s4104_s1, 1  ;;  %p868_p12 = scmp.eq.s32.totalorder %s2918_s25, 1 }
 0x11a   : > { %p3126_p13 = scmp.lt.s32.totalorder %s3837_s28, 2  ;;  %s1131_s0 = sand.u32 1, %s3833_s26  }
 0x11b   : > { %p4334_p0 = por %p862_p11, %p134_p4  ;;  %p4338_p2 = por %p868_p12, %p140_p9 }
 0x11c   : > { %s2935_s5 = sshll.u32 %s1131_s0, 3  ;;  %s2936_s24 = sshll.u32 %s3837_s28, 3 }
 0x11d   : > { %s4684_s10 = scalar_select %p4338_p2, 1, 0 }
 0x11e   : > { %s1139_s18 = scalar_lea.hbm %s4680_s21, %s2936_s24  ;;  %s1135_s16 = scalar_lea.vmem [#allocation2], %s2935_s5 }
 0x11f   : > { %s1143_s3 = sshll.u32 %s1135_s16, 4  ;;  %s1141_s4 = sshll.u32 %s1139_s18, 4  ;;  %s1144_s3 = int_to_ptr.vmem [resolvable:$true] %s1143_s3  ;;  %s1142_s4 = int_to_ptr.hbm [resolvable:$true] %s1141_s4 }
 0x120   : > { %p4346_p8 = pnand %p3126_p13, %p4321_p10  ;;  %s1132_s6 = scalar_lea.sflag [#allocation3], %s1131_s0 }
 0x121   : > { %s3713_s8 = sshra.s32 %s1142_s4, 4  ;;  %s3720_s5 = scalar_lea.hbm %s4680_s21, 16  ;;  %s3714_s8 = int_to_ptr.hbm [resolvable:$true] %s3713_s8 }
 0x122   : > { %s3715_s12 = scalar_lea.hbm %s3714_s8, 8  ;;  %p3717_p7 = pneg %p4346_p8 }
 0x123   : > { %p3716_p4 = scmp.ne.s32.totalorder %s3714_s8, %s3715_s12  ;;  %p3721_p12 = scmp.lt.s32.totalorder %s3714_s8, %s4680_s21 }
 0x124   : > { %p3722_p5 = scmp.lt.s32.totalorder %s3720_s5, %s3715_s12 }
 0x125   : > { %p3718_p9 = pnand %p3717_p7, %p3716_p4 }
 0x126   : > { %p3723_p1 = por %p3722_p5, %p3721_p12 }
 0x127   : > { %p3719_p11 = pneg %p3718_p9 }
 0x129   : > { %p3724_p2 = pnand %p3723_p1, %p3719_p11 }
 0x12b   : > { %3727 = shalt.err (!%p3724_p2)
}
 0x12c   : > { %3107 = dma.hbm_to_vmem [thread:$0]  (!%p4346_p8), %s1142_s4, 128, %s1144_s3, %s1132_s6  }
 0x12d   : > { %1158 = sbr.rel (%p4109_p3) target bundleno = 4606 (0x11fe), region = 160  ;;  %s4359_s0 = sand.u32 (!%p4109_p3), 1, %s3829_s23  }
 0x12e   : > { %s4636_s24 = sshll.u32 (!%p4109_p3), %s4359_s0, 3  ;;  %s1161_s18 = scalar_lea.sflag (!%p4109_p3), [#allocation3], %s4359_s0 }
 0x12f   : > { %s4365_s8 = scalar_lea.vmem (!%p4109_p3), [#allocation2], %s4636_s24 }
 0x132   : > { %3788 = dma.done.wait (%p4327_p6), %s1161_s18, 128  }
 0x133   : > { %3790 = vsyncadd (%p4327_p6), %s1161_s18, 4294967168  ;;  %p4687_p1 = scmp.eq.s32.totalorder %s4104_s1, 0 }
 0x135   : > { %3792 = dma.done.wait (%p4687_p1), [#allocation6], 1024   ;;  %p4688_p3 = pmov %p4687_p1 }
 0x136   : > { %p4689_p5 = pmov %p4687_p1 }
 0x137   : > { %3794 = vsyncadd (%p4688_p3), [#allocation6], 4294966272 }
 0x138   : > { %3796 = dma.done.wait (%p4689_p5), [#allocation9], 1024   ;;  %p4690_p10 = pmov %p4687_p1 }
 0x139   : > { %p4691_p13 = pmov %p4687_p1 }
 0x13a   : > { %3798 = vsyncadd (%p4690_p10), [#allocation9], 4294966272 }
 0x13b   : > { %3800 = dma.done.wait (%p4691_p13), [#allocation12], 528   ;;  %p4692_p2 = pmov %p4687_p1 }
 0x13c   : > { %p4693_p6 = pmov %p4687_p1 }
 0x13d   : > { %3802 = vsyncadd (%p4692_p2), [#allocation12], 4294966768 }
 0x13e   : > { %3804 = dma.done.wait (%p4693_p6), [#allocation15], 32   ;;  %p4694_p8 = pmov %p4687_p1 }
 0x13f   : > { %p4695_p4 = pmov %p4687_p1 }
 0x140   : > { %3806 = vsyncadd (%p4694_p8), [#allocation15], 4294967264 }
 0x141   : > { %3808 = dma.done.wait (%p4695_p4), [#allocation18], 528   ;;  %p4696_p7 = pmov %p4687_p1 }
 0x142   : > { %p4697_p9 = pmov %p4687_p1 }
 0x143   : > { %3810 = vsyncadd (%p4696_p7), [#allocation18], 4294966768 }
 0x144   : > { %3812 = dma.done.wait (%p4697_p9), [#allocation21], 32   ;;  %p4698_p11 = pmov %p4687_p1 }
 0x145   : > { %p4699_p12 = pmov %p4687_p1 }
 0x146   : > { %3814 = vsyncadd (%p4698_p11), [#allocation21], 4294967264 }
 0x147   : > { %3816 = dma.done.wait (%p4699_p12), [#allocation24], 272  }
 0x148   : > { %3818 = vsyncadd (%p4687_p1), [#allocation24], 4294967024  ;;  %s4700_s3 = sld [smem:[#allocation36_spill]]  ;;  %p1329_p3 = scmp.lt.s32.totalorder %s4104_s1, 1  ;;  %vm1415_vm0 = vcmask 261120   ;;  %v3890_v2 = vmov 32.0   ;;  %v1409_v54 = vlaneseq }
 0x149   : > { %s4701_s6 = sld [smem:[#allocation38_spill]]  ;;  %3251 = vrcp.f32 %v3890_v2  ;;  %vm1525_vm5 = vcmask 64512   ;;  %s3891_s16 = smov 112   ;;  %v3894_v58 = vmov 0.0  }
 0x14a   : > { %s4401_s12 = scalar_select %p1329_p3, %s4104_s1, 1  ;;  %v1410_v55 = vshrl.u32 %v1409_v54, 7  ;;  %v1412_v56 = vand.u32 127, %v1409_v54 }
 0x14b   : > { %s4702_s25 = sld [smem:[#allocation41_spill]] }
 0x14c   : > { %s2954_s4 = sshll.u32 %s4401_s12, 3  ;;  %s4703_s5 = sld [smem:[#allocation43_spill]]  ;;  %vm1413_vm6 = vcmp.gt.s32.totalorder %v1412_v56, %v1410_v55 }
 0x14d   : > { %s4704_s11 = sld [smem:[#allocation45_spill]]  ;;  %v4451_v59 = vsel %vm1413_vm6, -1e+30, %v3894_v58 }
 0x14e   : > { %s1332_s9 = scalar_lea.vmem %s4700_s3, %s2954_s4  ;;  %s4705_s18 = sld [smem:[#allocation39_spill]] }
 0x14f   : > { %v4407_v0 = vld [vmem:[%s1332_s9] sm:$0xff]  ;;  %v3252_v3 = vpop.eup %3251  ;;  %s4706_s3 = sld [smem:[#allocation40_spill]] }
 0x150   : > { %v1416_v1 = vsel %vm1415_vm0, %v4407_v0, 0.0  ;;  %v1420_v4 = vmul.f32 32.0, %v3252_v3  ;;  %vm1424_vm1 = vweird.f32 %v3252_v3  ;;  %s4707_s4 = sld [smem:[#allocation44_spill]] }
 0x151   : > { %1417 = vadd.xlane.f32.xlu0 %v1416_v1  ;;  %v1341_v14 = vld [vmem:[%s4702_s25 + $0x18] sm:$0xff]  ;;  %v1340_v17 = vld [vmem:[%s4702_s25 + $0x10] sm:$0xff]  ;;  %v1339_v20 = vld [vmem:[%s4702_s25 + $0x8] sm:$0xff]  ;;  %s4708_s9 = sld [smem:[#allocation42_spill]] }
 0x152   : > { %v1421_v5 = vsub.f32 1.0, %v1420_v4  ;;  %v1346_v15 = vld [vmem:[%s4703_s5 + $0x18] sm:$0xff]  ;;  %1471 = vmatpush.msra.mxu0 %v1341_v14  ;;  %v1345_v18 = vld [vmem:[%s4703_s5 + $0x10] sm:$0xff]  ;;  %v1344_v21 = vld [vmem:[%s4703_s5 + $0x8] sm:$0xff]  ;;  %s4709_s24 = sld [smem:[#allocation46_spill]] }
 0x153   : > { %v1351_v16 = vld [vmem:[%s4704_s11 + $0x18] sm:$0xff]  ;;  %1494 = vmatpush.msra.mxu1 %v1346_v15  ;;  %v1350_v19 = vld [vmem:[%s4704_s11 + $0x10] sm:$0xff]  ;;  %v1349_v22 = vld [vmem:[%s4704_s11 + $0x8] sm:$0xff] }
 0x154   : > { %v1422_v6 = vmul.f32 %v3252_v3, %v1421_v5  ;;  %1517 = vmatpush.msra.mxu2 %v1351_v16  ;;  %1472 = vmatpush.msra.mxu0 %v1340_v17  ;;  %v1338_v23 = vld [vmem:[%s4702_s25] sm:$0xff] }
 0x155   : > { %1495 = vmatpush.msra.mxu1 %v1345_v18  ;;  %v1343_v24 = vld [vmem:[%s4703_s5] sm:$0xff] }
 0x156   : > { %v1423_v7 = vadd.f32 %v3252_v3, %v1422_v6  ;;  %1518 = vmatpush.msra.mxu2 %v1350_v19  ;;  %1473 = vmatpush.msra.mxu0 %v1339_v20  ;;  %v1348_v25 = vld [vmem:[%s4704_s11] sm:$0xff] }
 0x157   : > { %1496 = vmatpush.msra.mxu1 %v1344_v21  ;;  %v3231_v35 = vld [vmem:[%s4705_s18] ss:$0 sm:$0xff]  ;;  %s3892_s18 = smov 120  }
 0x158   : > { %v4411_v8 = vsel %vm1424_vm1, %v3252_v3, %v1423_v7  ;;  %1519 = vmatpush.msra.mxu2 %v1349_v22  ;;  %1474 = vmatpush.msra.mxu0 %v1338_v23  ;;  %v3232_v38 = vld [vmem:[%s4706_s3] ss:$0 sm:$0xff]  ;;  %s3893_s3 = smov 104   ;;  %v1353_v23 = vld [vmem:[#allocation5] sm:$0xff] }
 0x159   : > { %1497 = vmatpush.msra.mxu1 %v1343_v24  ;;  %v3234_v41 = vld [vmem:[%s4707_s4] ss:$0 sm:$0xff]  ;;  %s4711_s4 = sld [smem:[#allocation49_spill]] }
 0x15a   : > { %1520 = vmatpush.msra.mxu2 %v1348_v25  ;;  %v3233_v43 = vld [vmem:[%s4708_s9] ss:$0 sm:$0xff]  ;;  %s4712_s9 = sld [smem:[#allocation50_spill]] }
 0x15b   : > { %v3235_v46 = vld [vmem:[%s4709_s24] ss:$0 sm:$0xff]  ;;  %s4710_s24 = sld [smem:[#allocation48_spill]] }
 0x1c4   : > { %v1418_v9 = vpop.xlane.xlu0 %1417 }
 0x1c5   : > { %v1426_v10 = vmul.f32 %v4411_v8, %v1418_v9 }
 0x1c7   : > { %v1427_v11 = vsub.f32 %v4407_v0, %v1426_v10 }
 0x1c9   : > { %v1428_v12 = vmul.f32 %v1427_v11, %v1427_v11 }
 0x1cb   : > { %v1429_v13 = vsel %vm1415_vm0, %v1428_v12, 0.0 }
 0x1cc   : > { %1430 = vadd.xlane.f32.xlu0 %v1429_v13 }
 0x23f   : > { %v1431_v26 = vpop.xlane.xlu0 %1430 }
 0x240   : > { %v1432_v27 = vmul.f32 %v1431_v26, %v4411_v8 }
 0x242   : > { %v1433_v28 = vadd.f32 1e-05, %v1432_v27 }
 0x244   : > { %3253 = vrsqrt.f32 %v1433_v28  ;;  %vm1440_vm3 = vweird.f32 %v1433_v28 }
 0x24a   : > { %v3254_v29 = vpop.eup %3253 }
 0x24b   : > { %v1435_v30 = vmul.f32 %v3254_v29, %v1433_v28  ;;  %vm1441_vm2 = vweird.f32 %v3254_v29 }
 0x24c   : > { %vm1442_vm4 = vmor %vm1440_vm3, %vm1441_vm2 }
 0x24d   : > { %v1436_v31 = vmul.f32 %v3254_v29, %v1435_v30 }
 0x24f   : > { %v1437_v32 = vmul.f32 0.5, %v1436_v31 }
 0x251   : > { %v1438_v33 = vsub.f32 1.5, %v1437_v32 }
 0x253   : > { %v1439_v34 = vmul.f32 %v3254_v29, %v1438_v33 }
 0x255   : > { %v1443_v36 = vsel %vm1442_vm4, %v3254_v29, %v1439_v34 }
 0x256   : > { %v1444_v37 = vmul.f32 %v1443_v36, %v1427_v11 }
 0x258   : > { %v1448_v39 = vmul.f32 %v3231_v35, %v1444_v37 }
 0x25a   : > { %v1452_v40 = vadd.f32 %v3232_v38, %v1448_v39 }
 0x25c   : > { %2955 = vmatmul.msk.f32.vlgmr.msra.gmra.mxu0 %vm1415_vm0, %v1452_v40  ;;  %2956 = vmatmul.msk.f32.vlgmr.msra.gmra.mxu1 %vm1415_vm0, %v1452_v40 }
 0x25d   : > { %2957 = vmatmul.msk.f32.vlgmr.msra.gmra.mxu2 %vm1415_vm0, %v1452_v40 }
 0x2d9   : > { %v1499_v42 = vpop.f32.mrf.mxu1  ;;  %v1476_v45 = vpop.f32.mrf.mxu0 }
 0x2da   : > { %v1500_v44 = vadd.f32 %v3234_v41, %v1499_v42  ;;  %v1477_v47 = vadd.f32 %v3233_v43, %v1476_v45 }
 0x2dc   : > { %1732 = vrot.lane.b32.xlu0 %v1500_v44, %s3891_s16  ;;  %1604 = vrot.lane.b32.xlu2 %v1500_v44, %s3892_s18 }
 0x2dd   : > { %2958 = vmatpush.xpose.msk.msra.mxu3 %vm1525_vm5, %v1500_v44 }
 0x2e0   : > { %v1522_v48 = vpop.f32.mrf.mxu2  ;;  %2959 = vmatmul.msk.f32.vlgmr.msra.gmra.mxu3 %vm1525_vm5, %v1477_v47 }
 0x2e1   : > { %v4441_v49 = vadd.f32 %v3235_v46, %v1522_v48 }
 0x2e3   : > { %1597 = vmatpush.msrb.mxu3 %v4441_v49 }
 0x2e4   : > { %1602 = vrot.lane.b32.xlu2 %v1477_v47, %s3892_s18 }
 0x2e5   : > { %1725 = vmatpush.msra.mxu3 %v1353_v23 }
 0x2ec   : > { %1730 = vrot.lane.b32.xlu2 %v1477_v47, %s3891_s16 }
 0x2f4   : > { %1835 = vrot.lane.b32.xlu2 %v1477_v47, %s3893_s3 }
 0x336   : > { %v1605_v50 = vpop.permute.xlu2 %1604 }
 0x337   : > { %2961 = vmatpush.xpose.msk.msrb.mxu0 %vm1525_vm5, %v1605_v50 }
 0x33e   : > { %v1603_v51 = vpop.permute.xlu2 %1602 }
 0x33f   : > { %2962 = vmatmul.msk.f32.vlgmr.msrb.gmra.mxu0 %vm1525_vm5, %v1603_v51 }
 0x346   : > { %v1731_v53 = vpop.permute.xlu2 %1730 }
 0x34e   : > { %v1733_v52 = vpop.permute.xlu0 %1732  ;;  %v1836_v14 = vpop.permute.xlu2 %1835 }
 0x34f   : > { %2966 = vmatpush.xpose.msk.msra.mxu0 %vm1525_vm5, %v1733_v52 }
 0x352   : > { %2967 = vmatmul.msk.f32.vlgmr.msra.gmra.mxu0 %vm1525_vm5, %v1731_v53 }
 0x363   : > { %v1549_v57 = vpop.f32.mrf.mxu3 }
 0x364   : > { %v1552_v60 = vmul.f32 0.35355338, %v1549_v57 }
 0x366   : > { %v1553_v61 = vadd.f32 %v1552_v60, %v4451_v59 }
 0x368   : > { %v1554_v62 = vsel %vm1525_vm5, %v1553_v61, -inf }
 0x369   : > { %1555 = vmax.xlane.f32.xlu1 %v1554_v62 }
 0x3bc   : > { %v1627_v63 = vpop.f32.mrf.mxu0 }
 0x3bd   : > { %v1630_v1 = vmul.f32 0.35355338, %v1627_v63 }
 0x3bf   : > { %v1631_v2 = vadd.f32 %v1630_v1, %v4451_v59 }
 0x3c1   : > { %v1632_v3 = vsel %vm1525_vm5, %v1631_v2, -inf }
 0x3c2   : > { %1633 = vmax.xlane.f32.xlu2 %v1632_v3 }
 0x3cf   : > { %v1755_v4 = vpop.f32.mrf.mxu0 }
 0x3d0   : > { %v1758_v5 = vmul.f32 0.35355338, %v1755_v4 }
 0x3d2   : > { %v1759_v6 = vadd.f32 %v1758_v5, %v4451_v59 }
 0x3d4   : > { %v1760_v7 = vsel %vm1525_vm5, %v1759_v6, -inf }
 0x3d5   : > { %1761 = vmax.xlane.f32.xlu0 %v1760_v7 }
 0x3dc   : > { %v1556_v9 = vpop.xlane.xlu1 %1555 }
 0x3dd   : > { %v1557_v10 = vsub.f32 %v1553_v61, %v1556_v9 }
 0x3df   : > { %v1558_v11 = vmul.f32 1.442695, %v1557_v10 }
 0x3e1   : > { %3255 = vpow2.f32 %v1558_v11 }
 0x3e7   : > { %v3256_v12 = vpop.eup %3255 }
 0x3e8   : > { %v1560_v13 = vsel %vm1525_vm5, %v3256_v12, 0.0 }
 0x3e9   : > { %1561 = vadd.xlane.f32.xlu1 %v1560_v13 }
 0x402   : > { %1837 = vrot.lane.b32.xlu1 %v1500_v44, %s3893_s3 }
 0x435   : > { %v1634_v15 = vpop.xlane.xlu2 %1633 }
 0x436   : > { %v1635_v16 = vsub.f32 %v1631_v2, %v1634_v15  ;;  %v1354_v15 = vld [vmem:[#allocation5 + $0x8] sm:$0xff] }
 0x437   : > { %1702 = vmatpush.msrb.mxu2 %v1354_v15 }
 0x438   : > { %v1636_v17 = vmul.f32 1.442695, %v1635_v16  ;;  %v1355_v16 = vld [vmem:[#allocation5 + $0x10] sm:$0xff] }
 0x439   : > { %1829 = vmatpush.msra.mxu2 %v1355_v16 }
 0x43a   : > { %3257 = vpow2.f32 %v1636_v17 }
 0x440   : > { %v4461_v18 = vpop.eup %3257 }
 0x441   : > { %v1638_v19 = vsel %vm1525_vm5, %v4461_v18, 0.0 }
 0x442   : > { %1639 = vadd.xlane.f32.xlu2 %v1638_v19 }
 0x448   : > { %v1762_v20 = vpop.xlane.xlu0 %1761 }
 0x449   : > { %v1763_v21 = vsub.f32 %v1759_v6, %v1762_v20 }
 0x44b   : > { %v1764_v22 = vmul.f32 1.442695, %v1763_v21 }
 0x44d   : > { %3259 = vpow2.f32 %v1764_v22 }
 0x453   : > { %v4465_v24 = vpop.eup %3259 }
 0x454   : > { %v1766_v25 = vsel %vm1525_vm5, %v4465_v24, 0.0 }
 0x455   : > { %1767 = vadd.xlane.f32.xlu0 %v1766_v25 }
 0x45c   : > { %v1562_v26 = vpop.xlane.xlu1 %1561 }
 0x45d   : > { %3261 = vrcp.f32 %v1562_v26  ;;  %v1574_v30 = vand.u32 2147483648, %v1562_v26  ;;  %v1572_v32 = vand.u32 2147483647, %v1562_v26  ;;  %vm1568_vm8 = vweird.f32 %v1562_v26 }
 0x45f   : > { %v1575_v34 = vor.u32 1.1754944e-38, %v1574_v30  ;;  %vm1573_vm10 = vcmp.eq.f32.partialorder %v1572_v32, 8.507059e+37 }
 0x463   : > { %v3262_v27 = vpop.eup %3261 }
 0x464   : > { %v1564_v28 = vmul.f32 %v3262_v27, %v1562_v26  ;;  %vm1569_vm7 = vweird.f32 %v3262_v27 }
 0x465   : > { %vm1570_vm9 = vmor %vm1568_vm8, %vm1569_vm7 }
 0x466   : > { %v1565_v29 = vsub.f32 1.0, %v1564_v28 }
 0x468   : > { %v1566_v31 = vmul.f32 %v3262_v27, %v1565_v29 }
 0x469   : > { %1785 = vrot.lane.b32.xlu0 %v4441_v49, %s3891_s16 }
 0x46a   : > { %v1567_v33 = vadd.f32 %v3262_v27, %v1566_v31  ;;  %v1356_v31 = vld [vmem:[#allocation5 + $0x18] sm:$0xff] }
 0x46c   : > { %v1571_v35 = vsel %vm1570_vm9, %v3262_v27, %v1567_v33 }
 0x46d   : > { %v1576_v36 = vsel %vm1573_vm10, %v1575_v34, %v1571_v35 }
 0x46e   : > { %v1578_v37 = vmul.f32 %v3256_v12, %v1576_v36 }
 0x470   : > { %2960 = vmatmul.msk.f32.vlgmr.msrb.gmra.mxu3 %vm1525_vm5, %v1578_v37  ;;  %v3236_v37 = vld [vmem:[%s4710_s24] ss:$0 sm:$0xff]  ;;  %s4713_s24 = sld [smem:[#allocation53_spill]] }
 0x474   : > { %v1838_v38 = vpop.permute.xlu1 %1837 }
 0x475   : > { %2970 = vmatpush.xpose.msk.msrb.mxu3 %vm1525_vm5, %v1838_v38 }
 0x4b5   : > { %v1640_v45 = vpop.xlane.xlu2 %1639 }
 0x4b6   : > { %3263 = vrcp.f32 %v1640_v45  ;;  %v1652_v61 = vand.u32 2147483648, %v1640_v45  ;;  %vm1646_vm12 = vweird.f32 %v1640_v45  ;;  %v1650_v62 = vand.u32 2147483647, %v1640_v45 }
 0x4b8   : > { %v1653_v2 = vor.u32 1.1754944e-38, %v1652_v61  ;;  %vm1651_vm14 = vcmp.eq.f32.partialorder %v1650_v62, 8.507059e+37 }
 0x4bc   : > { %v3264_v47 = vpop.eup %3263 }
 0x4bd   : > { %v1642_v51 = vmul.f32 %v3264_v47, %v1640_v45  ;;  %vm1647_vm11 = vweird.f32 %v3264_v47 }
 0x4be   : > { %vm1648_vm13 = vmor %vm1646_vm12, %vm1647_vm11 }
 0x4bf   : > { %v1643_v53 = vsub.f32 1.0, %v1642_v51  ;;  %v1365_v51 = vld [vmem:[#allocation8] sm:$0xff] }
 0x4c1   : > { %v1644_v55 = vmul.f32 %v3264_v47, %v1643_v53  ;;  %v1363_v53 = vld [vmem:[#allocation7 + $0x18] sm:$0xff] }
 0x4c8   : > { %v1768_v46 = vpop.xlane.xlu0 %1767 }
 0x4c9   : > { %3265 = vrcp.f32 %v1768_v46  ;;  %v1780_v5 = vand.u32 2147483648, %v1768_v46  ;;  %vm1774_vm1 = vweird.f32 %v1768_v46  ;;  %v1778_v6 = vand.u32 2147483647, %v1768_v46 }
 0x4cb   : > { %v1781_v12 = vor.u32 1.1754944e-38, %v1780_v5  ;;  %vm1779_vm3 = vcmp.eq.f32.partialorder %v1778_v6, 8.507059e+37  ;;  %v3238_v6 = vld [vmem:[%s4712_s9] ss:$0 sm:$0xff]  ;;  %s4716_s9 = sld [smem:[#allocation55_spill]] }
 0x4cf   : > { %v3266_v54 = vpop.eup %3265 }
 0x4d0   : > { %v1770_v56 = vmul.f32 %v3266_v54, %v1768_v46  ;;  %vm1775_vm15 = vweird.f32 %v3266_v54 }
 0x4d1   : > { %vm1776_vm2 = vmor %vm1774_vm1, %vm1775_vm15 }
 0x4d2   : > { %v1771_v60 = vsub.f32 1.0, %v1770_v56  ;;  %v1360_v56 = vld [vmem:[#allocation7] sm:$0xff] }
 0x4d4   : > { %v1772_v63 = vmul.f32 %v3266_v54, %v1771_v60 }
 0x4d6   : > { %v1773_v4 = vadd.f32 %v3266_v54, %v1772_v63 }
 0x4d8   : > { %v1777_v10 = vsel %vm1776_vm2, %v3266_v54, %v1773_v4  ;;  %v1362_v54 = vld [vmem:[#allocation7 + $0x10] sm:$0xff] }
 0x4d9   : > { %v1782_v13 = vsel %vm1779_vm3, %v1781_v12, %v1777_v10  ;;  %v3239_v10 = vld [vmem:[%s4713_s24] ss:$0 sm:$0xff]  ;;  %s4721_s24 = sld [smem:[#allocation63_spill]] }
 0x4db   : > { %v1786_v11 = vpop.permute.xlu0 %1785 }
 0x4f3   : > { %v1599_v39 = vpop.f32.mrf.mxu3 }
 0x4f4   : > { %2965 = vmatmul.msk.f32.vlgmr.msra.gmra.mxu3 %vm1525_vm5, %v1599_v39 }
 0x4fc   : > { %2971 = vmatmul.msk.f32.vlgmr.msrb.gmra.mxu3 %vm1525_vm5, %v1836_v14  ;;  %v1784_v14 = vmul.f32 %v4465_v24, %v1782_v13 }
 0x577   : > { %v4475_v40 = vpop.f32.mrf.mxu3 }
 0x57f   : > { %v1860_v41 = vpop.f32.mrf.mxu3 }
 0x580   : > { %v1863_v42 = vmul.f32 0.35355338, %v1860_v41 }
 0x582   : > { %v1864_v43 = vadd.f32 %v1863_v42, %v4451_v59  ;;  %v1645_v59 = vadd.f32 %v3264_v47, %v1644_v55  ;;  %v1361_v55 = vld [vmem:[#allocation7 + $0x8] sm:$0xff] }
 0x584   : > { %v1865_v44 = vsel %vm1525_vm5, %v1864_v43, -inf  ;;  %v1649_v1 = vsel %vm1648_vm13, %v3264_v47, %v1645_v59 }
 0x585   : > { %1866 = vmax.xlane.f32.xlu1 %v1865_v44  ;;  %v1654_v3 = vsel %vm1651_vm14, %v1653_v2, %v1649_v1 }
 0x586   : > { %v1656_v9 = vmul.f32 %v4461_v18, %v1654_v3  ;;  %v3237_v3 = vld [vmem:[%s4711_s4] ss:$0 sm:$0xff]  ;;  %s4715_s4 = scalar_lea.vmem %s4701_s6, %s4401_s12  ;;  %s4717_s12 = sld [smem:[#allocation58_spill]] }
 0x59e   : > { %1658 = vrot.lane.b32.xlu1 %v4441_v49, %s3892_s18 }
 0x5f8   : > { %v1867_v48 = vpop.xlane.xlu1 %1866 }
 0x5f9   : > { %v1868_v50 = vsub.f32 %v1864_v43, %v1867_v48  ;;  %v1368_v48 = vld [vmem:[#allocation8 + $0x18] sm:$0xff] }
 0x5fa   : > { %2019 = vmatpush.msra.mxu3 %v1368_v48 }
 0x5fb   : > { %v1869_v52 = vmul.f32 1.442695, %v1868_v50  ;;  %v1367_v50 = vld [vmem:[#allocation8 + $0x10] sm:$0xff] }
 0x5fc   : > { %2020 = vmatpush.msra.mxu3 %v1367_v50 }
 0x5fd   : > { %3267 = vpow2.f32 %v1869_v52  ;;  %v1407_v52 = vld [vmem:[%s4365_s8] sm:$0xff]  ;;  %s4714_s8 = sld [smem:[#allocation51_spill]] }
 0x603   : > { %v3268_v57 = vpop.eup %3267  ;;  %v3240_v13 = vld [vmem:[%s4714_s8] ss:$0 sm:$0xff]  ;;  %s2998_s8 = sshll.u32 %s4104_s1, 3 }
 0x604   : > { %v1871_v58 = vsel %vm1525_vm5, %v3268_v57, 0.0 }
 0x605   : > { %1872 = vadd.xlane.f32.xlu2 %v1871_v58 }
 0x610   : > { %v1659_v7 = vpop.permute.xlu1 %1658 }
 0x611   : > { %1679 = vmatpush.msrb.mxu1 %v1659_v7 }
 0x612   : > { %2963 = vmatmul.msk.f32.vlgmr.msrb.gmra.mxu1 %vm1525_vm5, %v1656_v9 }
 0x613   : > { %1806 = vmatpush.msra.mxu1 %v1786_v11 }
 0x615   : > { %1934 = vmatpush.msrb.mxu1 %v1356_v31  ;;  %v3241_v31 = vld [vmem:[%s4716_s9] ss:$0 sm:$0xff]  ;;  %s4722_s9 = sshll.u32 %s4359_s0, 3 }
 0x616   : > { %s1328_s5 = scalar_lea.vmem [#allocation26], %s4722_s9 }
 0x617   : > { %s2656_s6 = sshll.u32 %s1328_s5, 4  ;;  %s2657_s6 = int_to_ptr.vmem [resolvable:$true] %s2656_s6 }
 0x61a   : > { %2968 = vmatmul.msk.f32.vlgmr.msra.gmra.mxu1 %vm1525_vm5, %v1784_v14 }
 0x61d   : > { %1890 = vrot.lane.b32.xlu2 %v4441_v49, %s3893_s3 }
 0x678   : > { %v1873_v17 = vpop.xlane.xlu2 %1872 }
 0x679   : > { %3269 = vrcp.f32 %v1873_v17  ;;  %v1885_v22 = vand.u32 2147483648, %v1873_v17  ;;  %v1883_v24 = vand.u32 2147483647, %v1873_v17  ;;  %vm1879_vm6 = vweird.f32 %v1873_v17 }
 0x67b   : > { %v1886_v26 = vor.u32 1.1754944e-38, %v1885_v22  ;;  %vm1884_vm8 = vcmp.eq.f32.partialorder %v1883_v24, 8.507059e+37  ;;  %v1373_v22 = vld [vmem:[#allocation10 + $0x18] sm:$0xff]  ;;  %v1371_v24 = vld [vmem:[#allocation10 + $0x8] sm:$0xff] }
 0x67f   : > { %v3270_v18 = vpop.eup %3269 }
 0x680   : > { %v1875_v19 = vmul.f32 %v3270_v18, %v1873_v17  ;;  %v1891_v20 = vpop.permute.xlu2 %1890  ;;  %vm1880_vm4 = vweird.f32 %v3270_v18  ;;  %v4518_v17 = vld [vmem:[%s4715_s4] ss:$0 sm:$0xff]  ;;  %s2654_s4 = scalar_lea.hbm %s4721_s24, %s2998_s8 }
 0x681   : > { %1911 = vmatpush.msrb.mxu0 %v1891_v20  ;;  %vm1881_vm7 = vmor %vm1879_vm6, %vm1880_vm4  ;;  %s2658_s11 = sshll.u32 %s2654_s4, 4  ;;  %s2659_s11 = int_to_ptr.hbm [resolvable:$true] %s2658_s11 }
 0x682   : > { %v1876_v21 = vsub.f32 1.0, %v1875_v19 }
 0x683   : > { %2042 = vmatpush.msra.mxu0 %v1373_v22 }
 0x684   : > { %v1877_v23 = vmul.f32 %v3270_v18, %v1876_v21 }
 0x686   : > { %v1878_v25 = vadd.f32 %v3270_v18, %v1877_v23  ;;  %v1372_v23 = vld [vmem:[#allocation10 + $0x10] sm:$0xff] }
 0x687   : > { %2043 = vmatpush.msra.mxu0 %v1372_v23 }
 0x688   : > { %v1882_v49 = vsel %vm1881_vm7, %v3270_v18, %v1878_v25  ;;  %v1370_v25 = vld [vmem:[#allocation10] sm:$0xff] }
 0x689   : > { %v1887_v27 = vsel %vm1884_vm8, %v1886_v26, %v1882_v49  ;;  %2044 = vmatpush.msra.mxu0 %v1371_v24 }
 0x68a   : > { %v1889_v28 = vmul.f32 %v3268_v57, %v1887_v27 }
 0x68b   : > { %2045 = vmatpush.msra.mxu0 %v1370_v25 }
 0x68c   : > { %2972 = vmatmul.msk.f32.vlgmr.msrb.gmra.mxu0 %vm1525_vm5, %v1889_v28 }
 0x68f   : > { %v1681_v29 = vpop.f32.mrf.mxu1 }
 0x690   : > { %2964 = vmatmul.msk.f32.vlgmr.msrb.gmra.mxu2 %vm1525_vm5, %v1681_v29 }
 0x691   : > { %1993 = vmatpush.msrb.mxu2 %v1363_v53 }
 0x693   : > { %1994 = vmatpush.msrb.mxu2 %v1362_v54 }
 0x694   : > { %2976 = vmatmul.msk.f32.vlgmr.msra.gmra.mxu0 %vm1415_vm0, %v1407_v52 }
 0x695   : > { %1995 = vmatpush.msrb.mxu2 %v1361_v55 }
 0x697   : > { %v1808_v30 = vpop.f32.mrf.mxu1  ;;  %1996 = vmatpush.msrb.mxu2 %v1360_v56 }
 0x698   : > { %2969 = vmatmul.msk.f32.vlgmr.msra.gmra.mxu2 %vm1525_vm5, %v1808_v30 }
 0x709   : > { %v1913_v32 = vpop.f32.mrf.mxu0 }
 0x70a   : > { %2973 = vmatmul.msk.f32.vlgmr.msrb.gmra.mxu1 %vm1525_vm5, %v1913_v32 }
 0x711   : > { %v2047_v32 = vpop.f32.mrf.mxu0 }
 0x713   : > { %v1704_v33 = vpop.f32.mrf.mxu2 }
 0x714   : > { %v1728_v35 = vadd.f32 %v4475_v40, %v1704_v33  ;;  %v4530_v33 = vadd.f32 %v3241_v31, %v2047_v32 }
 0x716   : > { %2124 = vmatpush.msra.mxu2 %v4530_v33 }
 0x71b   : > { %v1831_v34 = vpop.f32.mrf.mxu2 }
 0x71c   : > { %v1834_v36 = vadd.f32 %v1831_v34, %v1728_v35  ;;  %v1375_v34 = vld [vmem:[#allocation11] sm:$0xff] }
 0x787   : > { %v1936_v38 = vpop.f32.mrf.mxu1 }
 0x788   : > { %v1939_v39 = vadd.f32 %v1936_v38, %v1834_v36 }
 0x78a   : > { %v1943_v41 = vadd.f32 %v3236_v37, %v1939_v39 }
 0x78c   : > { %v4495_v42 = vadd.f32 %v1943_v41, %v4407_v0  ;;  %v1366_v0 = vld [vmem:[#allocation8 + $0x8] sm:$0xff] }
 0x78d   : > { %2021 = vmatpush.msra.mxu3 %v1366_v0 }
 0x78e   : > { %v1945_v43 = vsel %vm1415_vm0, %v4495_v42, 0.0 }
 0x78f   : > { %1946 = vadd.xlane.f32.xlu0 %v1945_v43  ;;  %2022 = vmatpush.msra.mxu3 %v1365_v51 }
 0x790   : > { %2975 = vmatmul.msk.f32.vlgmr.msra.gmra.mxu3 %vm1415_vm0, %v1407_v52 }
 0x802   : > { %v1947_v44 = vpop.xlane.xlu0 %1946 }
 0x803   : > { %v1948_v45 = vmul.f32 %v1947_v44, %v4411_v8 }
 0x805   : > { %v1949_v46 = vsub.f32 %v4495_v42, %v1948_v45 }
 0x807   : > { %v1950_v47 = vmul.f32 %v1949_v46, %v1949_v46 }
 0x809   : > { %v1951_v40 = vsel %vm1415_vm0, %v1950_v47, 0.0 }
 0x80a   : > { %1952 = vadd.xlane.f32.xlu1 %v1951_v40 }
 0x813   : > { %v2024_v11 = vpop.f32.mrf.mxu3 }
 0x814   : > { %v2025_v12 = vadd.f32 %v3239_v10, %v2024_v11 }
 0x816   : > { %2977 = vmatpush.xpose.msk.msra.mxu1 %vm1525_vm5, %v2025_v12 }
 0x823   : > { %2131 = vrot.lane.b32.xlu1 %v2025_v12, %s3892_s18 }
 0x87d   : > { %v1953_v57 = vpop.xlane.xlu1 %1952 }
 0x87e   : > { %v1954_v58 = vmul.f32 %v1953_v57, %v4411_v8 }
 0x880   : > { %v1955_v59 = vadd.f32 1e-05, %v1954_v58 }
 0x882   : > { %3271 = vrsqrt.f32 %v1955_v59  ;;  %vm1962_vm10 = vweird.f32 %v1955_v59 }
 0x888   : > { %v3272_v60 = vpop.eup %3271 }
 0x889   : > { %v1957_v61 = vmul.f32 %v3272_v60, %v1955_v59  ;;  %vm1963_vm9 = vweird.f32 %v3272_v60 }
 0x88a   : > { %vm1964_vm11 = vmor %vm1962_vm10, %vm1963_vm9 }
 0x88b   : > { %v1958_v62 = vmul.f32 %v3272_v60, %v1957_v61 }
 0x88d   : > { %v1959_v63 = vmul.f32 0.5, %v1958_v62 }
 0x88f   : > { %v1960_v1 = vsub.f32 1.5, %v1959_v63 }
 0x891   : > { %v1961_v2 = vmul.f32 %v3272_v60, %v1960_v1 }
 0x893   : > { %v1965_v4 = vsel %vm1964_vm11, %v3272_v60, %v1961_v2 }
 0x894   : > { %v1966_v5 = vmul.f32 %v1965_v4, %v1949_v46 }
 0x895   : > { %v2132_v16 = vpop.permute.xlu1 %2131 }
 0x896   : > { %v1970_v7 = vmul.f32 %v3237_v3, %v1966_v5  ;;  %2980 = vmatpush.xpose.msk.msrb.mxu3 %vm1525_vm5, %v2132_v16 }
 0x898   : > { %v1974_v9 = vadd.f32 %v3238_v6, %v1970_v7 }
 0x89a   : > { %2974 = vmatmul.msk.f32.vlgmr.msrb.gmra.mxu2 %vm1415_vm0, %v1974_v9 }
 0x89b   : > { %2252 = vmatpush.msrb.mxu2 %v1375_v34 }
 0x91d   : > { %v1998_v14 = vpop.f32.mrf.mxu2 }
 0x91e   : > { %v1999_v15 = vadd.f32 %v3240_v13, %v1998_v14 }
 0x920   : > { %2362 = vrot.lane.b32.xlu1 %v1999_v15, %s3893_s3  ;;  %2978 = vmatmul.msk.f32.vlgmr.msra.gmra.mxu1 %vm1525_vm5, %v1999_v15 }
 0x992   : > { %v2363_v55 = vpop.permute.xlu1 %2362 }
 0x99d   : > { %v2073_v18 = vpop.f32.mrf.mxu1 }
 0x99e   : > { %v2076_v19 = vmul.f32 0.35355338, %v2073_v18 }
 0x9a0   : > { %v2080_v20 = vadd.f32 %v4518_v17, %v2076_v19 }
 0x9a2   : > { %v2081_v21 = vsel %vm1525_vm5, %v2080_v20, -inf }
 0x9a3   : > { %2082 = vmax.xlane.f32.xlu2 %v2081_v21 }
 0x9bb   : > { %2129 = vrot.lane.b32.xlu2 %v1999_v15, %s3892_s18 }
 0x9c3   : > { %2257 = vrot.lane.b32.xlu2 %v1999_v15, %s3891_s16 }
 0xa16   : > { %v2083_v26 = vpop.xlane.xlu2 %2082 }
 0xa17   : > { %v2084_v49 = vsub.f32 %v2080_v20, %v2083_v26 }
 0xa19   : > { %v2085_v27 = vmul.f32 1.442695, %v2084_v49 }
 0xa1b   : > { %3273 = vpow2.f32 %v2085_v27  ;;  %v1376_v27 = vld [vmem:[#allocation11 + $0x8] sm:$0xff] }
 0xa1c   : > { %2229 = vmatpush.msrb.mxu1 %v1376_v27  ;;  %v1390_v27 = vld [vmem:[%s4717_s12 + $0x18] sm:$0xff] }
 0xa1e   : > { %v2130_v28 = vpop.permute.xlu2 %2129 }
 0xa1f   : > { %2981 = vmatmul.msk.f32.vlgmr.msrb.gmra.mxu3 %vm1525_vm5, %v2130_v28 }
 0xa21   : > { %v3274_v29 = vpop.eup %3273 }
 0xa22   : > { %v2087_v30 = vsel %vm1525_vm5, %v3274_v29, 0.0 }
 0xa23   : > { %2088 = vadd.xlane.f32.xlu0 %v2087_v30 }
 0xa26   : > { %v2258_v54 = vpop.permute.xlu2 %2257 }
 0xa37   : > { %2364 = vrot.lane.b32.xlu0 %v2025_v12, %s3893_s3 }
 0xa3f   : > { %2259 = vrot.lane.b32.xlu0 %v2025_v12, %s3891_s16 }
 0xa96   : > { %v2089_v35 = vpop.xlane.xlu0 %2088 }
 0xa97   : > { %3275 = vrcp.f32 %v2089_v35  ;;  %v2101_v39 = vand.u32 2147483648, %v2089_v35  ;;  %v2099_v43 = vand.u32 2147483647, %v2089_v35  ;;  %vm2095_vm13 = vweird.f32 %v2089_v35 }
 0xa99   : > { %v2102_v47 = vor.u32 1.1754944e-38, %v2101_v39  ;;  %vm2100_vm15 = vcmp.eq.f32.partialorder %v2099_v43, 8.507059e+37 }
 0xa9d   : > { %v3276_v36 = vpop.eup %3275 }
 0xa9e   : > { %v2091_v37 = vmul.f32 %v3276_v36, %v2089_v35  ;;  %vm2096_vm12 = vweird.f32 %v3276_v36 }
 0xa9f   : > { %vm2097_vm14 = vmor %vm2095_vm13, %vm2096_vm12 }
 0xaa0   : > { %v2092_v38 = vsub.f32 1.0, %v2091_v37 }
 0xaa2   : > { %v2093_v41 = vmul.f32 %v3276_v36, %v2092_v38  ;;  %v2154_v44 = vpop.f32.mrf.mxu3 }
 0xaa3   : > { %v2157_v45 = vmul.f32 0.35355338, %v2154_v44 }
 0xaa4   : > { %v2094_v46 = vadd.f32 %v3276_v36, %v2093_v41 }
 0xaa5   : > { %v2158_v40 = vadd.f32 %v4518_v17, %v2157_v45 }
 0xaa6   : > { %v2098_v48 = vsel %vm2097_vm14, %v3276_v36, %v2094_v46 }
 0xaa7   : > { %v2103_v50 = vsel %vm2100_vm15, %v2102_v47, %v2098_v48  ;;  %v2159_v0 = vsel %vm1525_vm5, %v2158_v40, -inf  ;;  %v1377_v48 = vld [vmem:[#allocation11 + $0x10] sm:$0xff] }
 0xaa8   : > { %2160 = vmax.xlane.f32.xlu1 %v2159_v0  ;;  %v2105_v51 = vmul.f32 %v3274_v29, %v2103_v50  ;;  %2356 = vmatpush.msra.mxu1 %v1377_v48  ;;  %v3246_v48 = vld [vmem:[#allocation20] ss:$0 sm:$0xff] }
 0xaa9   : > { %v2365_v52 = vpop.permute.xlu0 %2364 }
 0xaaa   : > { %2979 = vmatmul.msk.f32.vlgmr.msra.gmra.mxu2 %vm1525_vm5, %v2105_v51 }
 0xaab   : > { %2989 = vmatpush.xpose.msk.msra.mxu2 %vm1525_vm5, %v2365_v52 }
 0xab1   : > { %v2260_v53 = vpop.permute.xlu0 %2259 }
 0xab2   : > { %2985 = vmatpush.xpose.msk.msra.mxu3 %vm1525_vm5, %v2260_v53 }
 0xab5   : > { %2986 = vmatmul.msk.f32.vlgmr.msra.gmra.mxu3 %vm1525_vm5, %v2258_v54 }
 0xb1b   : > { %v2161_v56 = vpop.xlane.xlu1 %2160 }
 0xb1c   : > { %v2162_v57 = vsub.f32 %v2158_v40, %v2161_v56 }
 0xb1e   : > { %v2163_v58 = vmul.f32 1.442695, %v2162_v57 }
 0xb20   : > { %3277 = vpow2.f32 %v2163_v58 }
 0xb26   : > { %v3278_v59 = vpop.eup %3277 }
 0xb27   : > { %v2165_v60 = vsel %vm1525_vm5, %v3278_v59, 0.0 }
 0xb28   : > { %2166 = vadd.xlane.f32.xlu1 %v2165_v60 }
 0xb2d   : > { %v2126_v61 = vpop.f32.mrf.mxu2 }
 0xb2e   : > { %2984 = vmatmul.msk.f32.vlgmr.msrb.gmra.mxu2 %vm1525_vm5, %v2126_v61 }
 0xb36   : > { %2990 = vmatmul.msk.f32.vlgmr.msra.gmra.mxu2 %vm1525_vm5, %v2363_v55 }
 0xb38   : > { %v2282_v62 = vpop.f32.mrf.mxu3 }
 0xb39   : > { %v2285_v63 = vmul.f32 0.35355338, %v2282_v62  ;;  %v1378_v62 = vld [vmem:[#allocation11 + $0x18] sm:$0xff] }
 0xb3b   : > { %v2286_v1 = vadd.f32 %v4518_v17, %v2285_v63 }
 0xb3d   : > { %v2287_v2 = vsel %vm1525_vm5, %v2286_v1, -inf }
 0xb3e   : > { %2288 = vmax.xlane.f32.xlu2 %v2287_v2 }
 0xb41   : > { %2185 = vrot.lane.b32.xlu1 %v4530_v33, %s3892_s18  ;;  %s4719_s18 = sld [smem:[#allocation61_spill]] }
 0xb9b   : > { %v2167_v3 = vpop.xlane.xlu1 %2166 }
 0xb9c   : > { %3279 = vrcp.f32 %v2167_v3  ;;  %v2179_v10 = vand.u32 2147483648, %v2167_v3  ;;  %vm2173_vm2 = vweird.f32 %v2167_v3  ;;  %v2177_v11 = vand.u32 2147483647, %v2167_v3 }
 0xb9e   : > { %v2180_v13 = vor.u32 1.1754944e-38, %v2179_v10  ;;  %vm2178_vm4 = vcmp.eq.f32.partialorder %v2177_v11, 8.507059e+37 }
 0xba2   : > { %v3280_v4 = vpop.eup %3279 }
 0xba3   : > { %v2169_v5 = vmul.f32 %v3280_v4, %v2167_v3  ;;  %vm2174_vm1 = vweird.f32 %v3280_v4 }
 0xba4   : > { %vm2175_vm3 = vmor %vm2173_vm2, %vm2174_vm1  ;;  %vm2532_vm1 = vcmask 523264  }
 0xba5   : > { %v2170_v6 = vsub.f32 1.0, %v2169_v5  ;;  %v3242_v5 = vld [vmem:[#allocation13] ss:$0 sm:$0xff] }
 0xba7   : > { %v2171_v7 = vmul.f32 %v3280_v4, %v2170_v6 }
 0xba9   : > { %v2172_v9 = vadd.f32 %v3280_v4, %v2171_v7 }
 0xbab   : > { %v2176_v12 = vsel %vm2175_vm3, %v3280_v4, %v2172_v9 }
 0xbac   : > { %v2181_v14 = vsel %vm2178_vm4, %v2180_v13, %v2176_v12 }
 0xbad   : > { %v2183_v20 = vmul.f32 %v3278_v59, %v2181_v14 }
 0xbb1   : > { %v4546_v15 = vpop.f32.mrf.mxu2  ;;  %v2289_v16 = vpop.xlane.xlu2 %2288 }
 0xbb2   : > { %v2290_v18 = vsub.f32 %v2286_v1, %v2289_v16 }
 0xbb3   : > { %v2186_v19 = vpop.permute.xlu1 %2185 }
 0xbb4   : > { %v2291_v21 = vmul.f32 1.442695, %v2290_v18  ;;  %2206 = vmatpush.msrb.mxu0 %v2186_v19  ;;  %v1385_v18 = vld [vmem:[#allocation17 + $0x18] sm:$0xff]  ;;  %v1384_v19 = vld [vmem:[#allocation17 + $0x10] sm:$0xff] }
 0xbb5   : > { %2982 = vmatmul.msk.f32.vlgmr.msrb.gmra.mxu0 %vm1525_vm5, %v2183_v20  ;;  %v1382_v20 = vld [vmem:[#allocation17] sm:$0xff] }
 0xbb6   : > { %3281 = vpow2.f32 %v2291_v21  ;;  %v1394_v21 = vld [vmem:[%s4717_s12 + $0x38] sm:$0xff] }
 0xbb7   : > { %2544 = vmatpush.msrb.mxu2 %v1394_v21 }
 0xbb9   : > { %v2387_v22 = vpop.f32.mrf.mxu2 }
 0xbba   : > { %v2390_v23 = vmul.f32 0.35355338, %v2387_v22  ;;  %v1393_v22 = vld [vmem:[%s4717_s12 + $0x30] sm:$0xff] }
 0xbbb   : > { %2545 = vmatpush.msrb.mxu2 %v1393_v22 }
 0xbbc   : > { %v3282_v24 = vpop.eup %3281  ;;  %v2391_v25 = vadd.f32 %v4518_v17, %v2390_v23  ;;  %v1392_v23 = vld [vmem:[%s4717_s12 + $0x28] sm:$0xff] }
 0xbbd   : > { %v2293_v26 = vsel %vm1525_vm5, %v3282_v24, 0.0  ;;  %2546 = vmatpush.msrb.mxu2 %v1392_v23 }
 0xbbe   : > { %2294 = vadd.xlane.f32.xlu2 %v2293_v26  ;;  %v2392_v49 = vsel %vm1525_vm5, %v2391_v25, -inf  ;;  %v1391_v26 = vld [vmem:[%s4717_s12 + $0x20] sm:$0xff] }
 0xbbf   : > { %2393 = vmax.xlane.f32.xlu0 %v2392_v49  ;;  %2547 = vmatpush.msrb.mxu2 %v1391_v26 }
 0xbc1   : > { %2548 = vmatpush.msrb.mxu2 %v1390_v27 }
 0xbd6   : > { %2312 = vrot.lane.b32.xlu2 %v4530_v33, %s3891_s16  ;;  %s4718_s16 = sld [smem:[#allocation60_spill]] }
 0xc31   : > { %v2295_v28 = vpop.xlane.xlu2 %2294 }
 0xc32   : > { %3283 = vrcp.f32 %v2295_v28  ;;  %v2394_v29 = vpop.xlane.xlu0 %2393  ;;  %v2208_v30 = vpop.f32.mrf.mxu0  ;;  %v2307_v37 = vand.u32 2147483648, %v2295_v28  ;;  %v2305_v41 = vand.u32 2147483647, %v2295_v28  ;;  %vm2301_vm7 = vweird.f32 %v2295_v28 }
 0xc33   : > { %v2395_v31 = vsub.f32 %v2391_v25, %v2394_v29  ;;  %2983 = vmatmul.msk.f32.vlgmr.msrb.gmra.mxu1 %vm1525_vm5, %v2208_v30 }
 0xc34   : > { %v2308_v45 = vor.u32 1.1754944e-38, %v2307_v37  ;;  %vm2306_vm9 = vcmp.eq.f32.partialorder %v2305_v41, 8.507059e+37  ;;  %2520 = vmatpush.msrb.mxu1 %v1385_v18  ;;  %v3244_v37 = vld [vmem:[#allocation16] ss:$0 sm:$0xff] }
 0xc35   : > { %v2396_v32 = vmul.f32 1.442695, %v2395_v31  ;;  %v1389_v41 = vld [vmem:[%s4717_s12 + $0x10] sm:$0xff] }
 0xc36   : > { %2521 = vmatpush.msrb.mxu1 %v1384_v19  ;;  %2549 = vmatpush.msrb.mxu2 %v1389_v41 }
 0xc37   : > { %3285 = vpow2.f32 %v2396_v32 }
 0xc38   : > { %v3284_v17 = vpop.eup %3283 }
 0xc39   : > { %v2297_v34 = vmul.f32 %v3284_v17, %v2295_v28  ;;  %v2313_v35 = vpop.permute.xlu2 %2312  ;;  %vm2302_vm6 = vweird.f32 %v3284_v17 }
 0xc3a   : > { %2333 = vmatpush.msra.mxu0 %v2313_v35  ;;  %vm2303_vm8 = vmor %vm2301_vm7, %vm2302_vm6  ;;  %vm2617_vm6 = vcmask 130048  }
 0xc3b   : > { %v2298_v36 = vsub.f32 1.0, %v2297_v34  ;;  %v3243_v34 = vld [vmem:[#allocation14] ss:$0 sm:$0xff] }
 0xc3c   : > { %2461 = vmatpush.msrb.mxu0 %v1378_v62 }
 0xc3d   : > { %v3286_v38 = vpop.eup %3285  ;;  %v2299_v39 = vmul.f32 %v3284_v17, %v2298_v36 }
 0xc3e   : > { %v2398_v43 = vsel %vm1525_vm5, %v3286_v38, 0.0 }
 0xc3f   : > { %v2300_v44 = vadd.f32 %v3284_v17, %v2299_v39  ;;  %2399 = vadd.xlane.f32.xlu0 %v2398_v43  ;;  %v1388_v43 = vld [vmem:[%s4717_s12 + $0x8] sm:$0xff] }
 0xc40   : > { %2550 = vmatpush.msrb.mxu2 %v1388_v43 }
 0xc41   : > { %v2304_v46 = vsel %vm2303_vm8, %v3284_v17, %v2300_v44  ;;  %v1387_v44 = vld [vmem:[%s4717_s12] sm:$0xff]  ;;  %s3757_s12 = sshra.s32 %s2659_s11, 4  ;;  %s3758_s12 = int_to_ptr.hbm [resolvable:$true] %s3757_s12 }
 0xc42   : > { %v2309_v47 = vsel %vm2306_vm9, %v2308_v45, %v2304_v46  ;;  %2551 = vmatpush.msrb.mxu2 %v1387_v44  ;;  %v3245_v45 = vld [vmem:[#allocation19] ss:$0 sm:$0xff]  ;;  %s3759_s1 = scalar_lea.hbm %s3758_s12, 8  ;;  %p3764_p2 = scmp.lt.s32.totalorder %s3758_s12, %s4721_s24 }
 0xc43   : > { %v2311_v40 = vmul.f32 %v3282_v24, %v2309_v47  ;;  %p3760_p5 = scmp.ne.s32.totalorder %s3758_s12, %s3759_s1 }
 0xc45   : > { %2987 = vmatmul.msk.f32.vlgmr.msra.gmra.mxu0 %vm1525_vm5, %v2311_v40  ;;  %p3761_p10 = pnand %p3760_p5, %p4334_p0 }
 0xc47   : > { %p3762_p13 = pneg %p3761_p10 }
 0xc53   : > { %2417 = vrot.lane.b32.xlu0 %v4530_v33, %s3893_s3  ;;  %s4720_s3 = sld [smem:[#allocation62_spill]] }
 0xcb0   : > { %v2231_v1 = vpop.f32.mrf.mxu1 }
 0xcb1   : > { %v2255_v3 = vadd.f32 %v4546_v15, %v2231_v1 }
 0xcb2   : > { %v2400_v50 = vpop.xlane.xlu0 %2399 }
 0xcb3   : > { %3287 = vrcp.f32 %v2400_v50  ;;  %v2412_v53 = vand.u32 2147483648, %v2400_v50  ;;  %v2410_v55 = vand.u32 2147483647, %v2400_v50  ;;  %vm2406_vm11 = vweird.f32 %v2400_v50 }
 0xcb5   : > { %v2413_v57 = vor.u32 1.1754944e-38, %v2412_v53  ;;  %vm2411_vm13 = vcmp.eq.f32.partialorder %v2410_v55, 8.507059e+37 }
 0xcb9   : > { %v3288_v0 = vpop.eup %3287 }
 0xcba   : > { %v2402_v51 = vmul.f32 %v3288_v0, %v2400_v50  ;;  %vm2407_vm10 = vweird.f32 %v3288_v0 }
 0xcbb   : > { %vm2408_vm12 = vmor %vm2406_vm11, %vm2407_vm10 }
 0xcbc   : > { %v2403_v52 = vsub.f32 1.0, %v2402_v51 }
 0xcbe   : > { %v2404_v54 = vmul.f32 %v3288_v0, %v2403_v52 }
 0xcc0   : > { %v2405_v56 = vadd.f32 %v3288_v0, %v2404_v54 }
 0xcc2   : > { %v2409_v58 = vsel %vm2408_vm12, %v3288_v0, %v2405_v56  ;;  %v2335_v59 = vpop.f32.mrf.mxu0 }
 0xcc3   : > { %v2414_v60 = vsel %vm2411_vm13, %v2413_v57, %v2409_v58  ;;  %2988 = vmatmul.msk.f32.vlgmr.msra.gmra.mxu1 %vm1525_vm5, %v2335_v59  ;;  %v1401_v58 = vld [vmem:[%s4718_s16 + $0x18] sm:$0xff]  ;;  %v1400_v59 = vld [vmem:[%s4718_s16 + $0x10] sm:$0xff] }
 0xcc4   : > { %v2416_v33 = vmul.f32 %v3286_v38, %v2414_v60  ;;  %v1399_v60 = vld [vmem:[%s4718_s16 + $0x8] sm:$0xff] }
 0xcc5   : > { %v2418_v61 = vpop.permute.xlu0 %2417 }
 0xcc6   : > { %2438 = vmatpush.msrb.mxu3 %v2418_v61 }
 0xcc7   : > { %2991 = vmatmul.msk.f32.vlgmr.msrb.gmra.mxu3 %vm1525_vm5, %v2416_v33  ;;  %v1398_v33 = vld [vmem:[%s4718_s16] sm:$0xff] }
 0xcc8   : > { %2605 = vmatpush.msra.mxu3 %v1401_v58 }
 0xcca   : > { %2606 = vmatpush.msra.mxu3 %v1400_v59 }
 0xccc   : > { %2607 = vmatpush.msra.mxu3 %v1399_v60 }
 0xcce   : > { %2608 = vmatpush.msra.mxu3 %v1398_v33 }
 0xd40   : > { %v2358_v2 = vpop.f32.mrf.mxu1 }
 0xd41   : > { %v2361_v4 = vadd.f32 %v2358_v2, %v2255_v3 }
 0xd4a   : > { %v2440_v63 = vpop.f32.mrf.mxu3 }
 0xd4b   : > { %2992 = vmatmul.msk.f32.vlgmr.msrb.gmra.mxu0 %vm1525_vm5, %v2440_v63 }
 0xdc8   : > { %v2463_v6 = vpop.f32.mrf.mxu0 }
 0xdc9   : > { %v2466_v7 = vadd.f32 %v2463_v6, %v2361_v4 }
 0xdcb   : > { %v2470_v9 = vadd.f32 %v3242_v5, %v2466_v7  ;;  %v3247_v7 = vld [vmem:[#allocation22] ss:$0 sm:$0xff] }
 0xdcd   : > { %v2471_v10 = vadd.f32 %v2470_v9, %v4495_v42  ;;  %v1383_v42 = vld [vmem:[#allocation17 + $0x8] sm:$0xff] }
 0xdce   : > { %2522 = vmatpush.msrb.mxu1 %v1383_v42  ;;  %v3250_v42 = vld [vmem:[%s4720_s3] ss:$0 sm:$0xff]  ;;  %s3763_s3 = scalar_lea.hbm %s4721_s24, 16 }
 0xdcf   : > { %v2472_v11 = vsel %vm1415_vm0, %v2471_v10, 0.0  ;;  %p3765_p6 = scmp.lt.s32.totalorder %s3763_s3, %s3759_s1 }
 0xdd0   : > { %2473 = vadd.xlane.f32.xlu0 %v2472_v11  ;;  %2523 = vmatpush.msrb.mxu1 %v1382_v20  ;;  %v3248_v11 = vld [vmem:[#allocation23] ss:$0 sm:$0xff] }
 0xdd1   : > { %p3766_p8 = por %p3765_p6, %p3764_p2 }
 0xdd3   : > { %p3767_p4 = pnand %p3766_p8, %p3762_p13 }
 0xe43   : > { %v2474_v12 = vpop.xlane.xlu0 %2473 }
 0xe44   : > { %v2475_v13 = vmul.f32 %v2474_v12, %v4411_v8 }
 0xe46   : > { %v2476_v14 = vsub.f32 %v2471_v10, %v2475_v13  ;;  %v1404_v13 = vld [vmem:[#allocation25 + $0x8] sm:$0xff] }
 0xe47   : > { %2635 = vmatpush.msra.mxu0 %v1404_v13 }
 0xe48   : > { %v2477_v16 = vmul.f32 %v2476_v14, %v2476_v14 }
 0xe4a   : > { %v2478_v15 = vsel %vm1415_vm0, %v2477_v16, 0.0  ;;  %v3249_v16 = vld [vmem:[%s4719_s18] ss:$0 sm:$0xff]  ;;  %s2644_s18 = scalar_lea.sflag [#allocation4], %s4359_s0 }
 0xe4b   : > { %2479 = vadd.xlane.f32.xlu1 %v2478_v15 }
 0xebe   : > { %v2480_v24 = vpop.xlane.xlu1 %2479 }
 0xebf   : > { %v2481_v25 = vmul.f32 %v2480_v24, %v4411_v8 }
 0xec1   : > { %v2482_v49 = vadd.f32 1e-05, %v2481_v25 }
 0xec3   : > { %3289 = vrsqrt.f32 %v2482_v49  ;;  %vm2489_vm14 = vweird.f32 %v2482_v49 }
 0xec9   : > { %v3290_v28 = vpop.eup %3289 }
 0xeca   : > { %v2484_v29 = vmul.f32 %v3290_v28, %v2482_v49  ;;  %vm2490_vm5 = vweird.f32 %v3290_v28 }
 0xecb   : > { %vm2491_vm15 = vmor %vm2489_vm14, %vm2490_vm5 }
 0xecc   : > { %v2485_v30 = vmul.f32 %v3290_v28, %v2484_v29 }
 0xece   : > { %v2486_v31 = vmul.f32 0.5, %v2485_v30 }
 0xed0   : > { %v2487_v32 = vsub.f32 1.5, %v2486_v31 }
 0xed2   : > { %v2488_v17 = vmul.f32 %v3290_v28, %v2487_v32 }
 0xed4   : > { %v2492_v35 = vsel %vm2491_vm15, %v3290_v28, %v2488_v17 }
 0xed5   : > { %v2493_v36 = vmul.f32 %v2492_v35, %v2476_v14  ;;  %v1403_v14 = vld [vmem:[#allocation25] sm:$0xff] }
 0xed6   : > { %2636 = vmatpush.msra.mxu0 %v1403_v14 }
 0xed7   : > { %v2497_v38 = vmul.f32 %v3243_v34, %v2493_v36 }
 0xed9   : > { %v2501_v39 = vadd.f32 %v3244_v37, %v2497_v38 }
 0xedb   : > { %2993 = vmatmul.msk.f32.vlgmr.msrb.gmra.mxu1 %vm1415_vm0, %v2501_v39 }
 0xf58   : > { %v2525_v46 = vpop.f32.mrf.mxu1 }
 0xf59   : > { %v2526_v47 = vadd.f32 %v3245_v45, %v2525_v46 }
 0xf5b   : > { %v2528_v40 = vmax.f32 %v2526_v47, 0.0 }
 0xf5d   : > { %2994 = vmatmul.msk.f32.vlgmr.msrb.gmra.mxu2 %vm2532_vm1, %v2528_v40 }
 0xfe0   : > { %v2553_v50 = vpop.f32.mrf.mxu2 }
 0xfe1   : > { %v2554_v0 = vadd.f32 %v3246_v48, %v2553_v50 }
 0xfe3   : > { %v2556_v51 = vadd.f32 %v2554_v0, %v2471_v10 }
 0xfe5   : > { %v2557_v52 = vsel %vm1415_vm0, %v2556_v51, 0.0 }
 0xfe6   : > { %2558 = vadd.xlane.f32.xlu2 %v2557_v52 }
0x1059   : > { %v2559_v53 = vpop.xlane.xlu2 %2558 }
0x105a   : > { %v2560_v54 = vmul.f32 %v2559_v53, %v4411_v8 }
0x105c   : > { %v2561_v55 = vsub.f32 %v2556_v51, %v2560_v54 }
0x105e   : > { %v2562_v56 = vmul.f32 %v2561_v55, %v2561_v55 }
0x1060   : > { %v2563_v57 = vsel %vm1415_vm0, %v2562_v56, 0.0 }
0x1061   : > { %2564 = vadd.xlane.f32.xlu0 %v2563_v57 }
0x10d4   : > { %v2565_v61 = vpop.xlane.xlu0 %2564 }
0x10d5   : > { %v2566_v62 = vmul.f32 %v2565_v61, %v4411_v8 }
0x10d7   : > { %v2567_v63 = vadd.f32 1e-05, %v2566_v62 }
0x10d9   : > { %3291 = vrsqrt.f32 %v2567_v63  ;;  %vm2574_vm3 = vweird.f32 %v2567_v63 }
0x10df   : > { %v3292_v1 = vpop.eup %3291 }
0x10e0   : > { %v2569_v2 = vmul.f32 %v3292_v1, %v2567_v63  ;;  %vm2575_vm2 = vweird.f32 %v3292_v1 }
0x10e1   : > { %vm2576_vm4 = vmor %vm2574_vm3, %vm2575_vm2 }
0x10e2   : > { %v2570_v3 = vmul.f32 %v3292_v1, %v2569_v2 }
0x10e4   : > { %v2571_v4 = vmul.f32 0.5, %v2570_v3 }
0x10e6   : > { %v2572_v5 = vsub.f32 1.5, %v2571_v4 }
0x10e8   : > { %v2573_v6 = vmul.f32 %v3292_v1, %v2572_v5 }
0x10ea   : > { %v2577_v9 = vsel %vm2576_vm4, %v3292_v1, %v2573_v6 }
0x10eb   : > { %v2578_v10 = vmul.f32 %v2577_v9, %v2561_v55 }
0x10ed   : > { %v2582_v8 = vmul.f32 %v3247_v7, %v2578_v10 }
0x10ef   : > { %v2586_v12 = vadd.f32 %v3248_v11, %v2582_v8 }
0x10f1   : > { %2995 = vmatmul.msk.f32.vlgmr.msra.gmra.mxu3 %vm1415_vm0, %v2586_v12 }
0x1174   : > { %v2610_v15 = vpop.f32.mrf.mxu3 }
0x1175   : > { %v2611_v18 = vadd.f32 %v3249_v16, %v2610_v15 }
0x1177   : > { %v2613_v19 = vmax.f32 %v2611_v18, 0.0 }
0x1179   : > { %2996 = vmatmul.msk.f32.vlgmr.msra.gmra.mxu0 %vm2617_vm6, %v2613_v19 }
0x11f6   : > { %v2638_v20 = vpop.f32.mrf.mxu0 }
0x11f7   : > { %v2639_v21 = vadd.f32 %v3250_v42, %v2638_v20 }
0x11f9   : > { %v2641_v22 = vadd.f32 %v2639_v21, %v2556_v51 }
0x11fb   : > { %2642 = vst.msk [vmem:[%s1328_s5] sm:$0xff] %vm1415_vm0, %v2641_v22 }
0x11fc   : > { %3770 = shalt.err (!%p3767_p4)
}
0x11fd   : > { %3059 = dma.vmem_to_hbm [thread:$0]  (%p4334_p0), %s2657_s6, 128, %s2659_s11, %s2644_s18  }
0x11fe PF: > { %s2670_s0 = sand.u32 1, %s3825_s22   ;;  %p4723_p7 = scmp.ne.s32.totalorder %s4684_s10, 0 }
0x11ff   : > { %p4724_p9 = scmp.ge.s32.totalorder %s3837_s28, 2  ;;  %s2671_s5 = scalar_lea.sflag [#allocation4], %s2670_s0 }
0x1201   : > { %p3109_p11 = pnand %p4724_p9, %p4723_p7 }
0x1203   : > { %p3110_p12 = pneg %p3109_p11 }
0x1205   : > { %3820 = dma.done.wait (%p3110_p12), %s2671_s5, 128  }
0x1206   : > { %3822 = vsyncadd (%p3110_p12), %s2671_s5, 4294967168  ;;  %p91_p1 = scmp.ge.s32.totalorder %s4308_s15, 4   ;;  %s4725_s22 = smov %s3829_s23 }
0x1207   : > { %s4726_s23 = smov %s3833_s26  ;;  %s4727_s26 = smov %s4319_s2 }
0x1208   : > { %s4728_s28 = smov %s4308_s15  ;;  %93 = sbr.rel (!%p91_p1) target bundleno = 82 (0x52), region = 302 }
0x120d   :  { %2677 = vsyncpa [#allocation3], 1 }
0x120e   :  { %2679 = vsyncpa [#allocation3 + $0x1], 1 }
0x120f   :  { %2680 = vsyncpa [#allocation6], 1 }
0x1210   :  { %2681 = vsyncpa [#allocation9], 1 }
0x1211   :  { %2682 = vsyncpa [#allocation12], 1 }
0x1212   :  { %2683 = vsyncpa [#allocation15], 1 }
0x1213   :  { %2684 = vsyncpa [#allocation18], 1 }
0x1214   :  { %2685 = vsyncpa [#allocation21], 1 }
0x1215   :  { %2686 = vsyncpa [#allocation24], 1 }
0x1216   :  { %2687 = vsyncpa [#allocation4], 1 }
0x1217   :  { %2689 = vsyncpa [#allocation4 + $0x1], 1 }

</bundles_post_ra>
